<compile_context>
chip_gen: v5e
topology: v5e:2x2
jax: 0.10.0
libtpu: 0.0.40
codegen_flags: <defaults>
</compile_context>

<pallas_src>
import math
from functools import partial

import jax
import jax.numpy as jnp
from jax import lax
from jax.experimental import pallas as pl
from jax.experimental.pallas import tpu as pltpu

BBOX_XFORM_CLIP = math.log(1000.0 / 16.0)


def _round_up(x, m):
    return ((x + m - 1) // m) * m


# ----------------------------------------------------------------------------
# Fused Pallas kernel: RPN head + box decode, gridded over images.
#
# Output slab per (h, w) row, width padded to a multiple of 128 lanes:
#   [obj_logit(A) | prob(A) | masked_prob(A) | x1(A) | y1(A) | x2(A) | y2(A) | 0]
# ----------------------------------------------------------------------------
def make_rpn_fused_kernel(H, W, C, A, out_w, min_size, score_thresh):
    HW = H * W

    def kernel(sizes_ref, x_ref, w1_ref, b1_ref, w2_ref, b2_ref, anc_ref,
               out_ref):
        i = pl.program_id(0)
        img_h = sizes_ref[i, 0].astype(jnp.float32)
        img_w = sizes_ref[i, 1].astype(jnp.float32)

        # --- 3x3 conv (padding=1) as 9 accumulated matmuls on shifted
        #     in-VMEM row windows; bf16 inputs, f32 accumulation.
        acc = jnp.zeros((HW, C), jnp.float32)
        for kx in range(3):
            for ky in range(3):
                win = x_ref[0, kx, pl.ds(ky * W, HW), :]          # (HW, C) bf16
                acc = acc + jnp.dot(win, w1_ref[ky, kx],
                                    preferred_element_type=jnp.float32)
        t = jnp.maximum(acc + b1_ref[...], 0.0)

        # --- fused 1x1 objectness + bbox-delta convs: one lane-dense matmul.
        head = jnp.dot(t.astype(jnp.bfloat16), w2_ref[...],
                       preferred_element_type=jnp.float32) + b2_ref[...]

        obj = head[:, 0:A]
        dx = head[:, A:2 * A]
        dy = head[:, 2 * A:3 * A]
        dw = jnp.minimum(head[:, 3 * A:4 * A], BBOX_XFORM_CLIP)
        dh = jnp.minimum(head[:, 4 * A:5 * A], BBOX_XFORM_CLIP)

        # --- BoxCoder.decode (weights (1,1,1,1)) on SoA anchor columns.
        anc = anc_ref[...]
        ax1 = anc[:, 0:A]
        ay1 = anc[:, A:2 * A]
        ax2 = anc[:, 2 * A:3 * A]
        ay2 = anc[:, 3 * A:4 * A]
        aw = ax2 - ax1
        ah = ay2 - ay1
        acx = ax1 + 0.5 * aw
        acy = ay1 + 0.5 * ah

        pcx = dx * aw + acx
        pcy = dy * ah + acy
        pw = jnp.exp(dw) * aw
        ph = jnp.exp(dh) * ah

        # clip_boxes_to_image with the per-image size.
        x1 = jnp.clip(pcx - 0.5 * pw, 0.0, img_w)
        x2 = jnp.clip(pcx + 0.5 * pw, 0.0, img_w)
        y1 = jnp.clip(pcy - 0.5 * ph, 0.0, img_h)
        y2 = jnp.clip(pcy + 0.5 * ph, 0.0, img_h)

        prob = 1.0 / (1.0 + jnp.exp(-obj))
        keep = ((x2 - x1) >= min_size) & ((y2 - y1) >= min_size) \
               & (prob >= score_thresh)
        masked = jnp.where(keep, prob, -1.0)      # validity folded into score

        pad = jnp.zeros((HW, out_w - 7 * A), jnp.float32)
        out_ref[0] = jnp.concatenate([obj, prob, masked, x1, y1, x2, y2, pad],
                                     axis=1)

    return kernel


def run_rpn_fused(image_sizes, x_shift, w1, b1, w2, b2, anchors_soa, *,
                  H, W, C, A, out_w, min_size, score_thresh):
    N = x_shift.shape[0]
    HW = H * W
    HpW = (H + 2) * W
    # TODO(synk): very large single-level feature maps would need row tiling
    # with a manual halo DMA (memory_space=pl.ANY); per-image blocks are
    # sufficient for typical FPN levels and this demo.
    grid_spec = pltpu.PrefetchScalarGridSpec(
        num_scalar_prefetch=1,
        grid=(N,),
        in_specs=[
            pl.BlockSpec((1, 3, HpW, C), lambda i, sz: (i, 0, 0, 0)),
            pl.BlockSpec((3, 3, C, C), lambda i, sz: (0, 0, 0, 0)),
            pl.BlockSpec((1, C), lambda i, sz: (0, 0)),
            pl.BlockSpec((C, out_w), lambda i, sz: (0, 0)),
            pl.BlockSpec((1, out_w), lambda i, sz: (0, 0)),
            pl.BlockSpec((HW, 4 * A), lambda i, sz: (0, 0)),
        ],
        out_specs=pl.BlockSpec((1, HW, out_w), lambda i, sz: (i, 0, 0)),
    )
    return pl.pallas_call(
        make_rpn_fused_kernel(H, W, C, A, out_w, min_size, score_thresh),
        grid_spec=grid_spec,
        out_shape=jax.ShapeDtypeStruct((N, HW, out_w), jnp.float32),
        compiler_params=pltpu.CompilerParams(
            dimension_semantics=("parallel",),
            vmem_limit_bytes=48 * 1024 * 1024),
    )(image_sizes, x_shift, w1, b1, w2, b2, anchors_soa)


# ----------------------------------------------------------------------------
# Plain-JAX glue (anchor generation, top-k selection, NMS).
# ----------------------------------------------------------------------------
def generate_anchors(sizes, aspect_ratios, grid_h, grid_w, stride_h, stride_w):
    scales = jnp.asarray(sizes, jnp.float32)
    ratios = jnp.asarray(aspect_ratios, jnp.float32)
    h_ratios = jnp.sqrt(ratios)
    w_ratios = 1.0 / h_ratios
    ws = (w_ratios[:, None] * scales[None, :]).reshape(-1)
    hs = (h_ratios[:, None] * scales[None, :]).reshape(-1)
    base = jnp.round(jnp.stack([-ws, -hs, ws, hs], axis=1) / 2.0)
    shifts_x = jnp.arange(grid_w, dtype=jnp.float32) * stride_w
    shifts_y = jnp.arange(grid_h, dtype=jnp.float32) * stride_h
    sy, sx = jnp.meshgrid(shifts_y, shifts_x, indexing="ij")
    shifts = jnp.stack(
        [sx.reshape(-1), sy.reshape(-1), sx.reshape(-1), sy.reshape(-1)],
        axis=1)
    anchors = (shifts[:, None, :] + base[None, :, :]).reshape(-1, 4)
    return anchors  # ordered (h, w, a)


def get_top_n_idx(objectness, num_anchors_per_level, pre_nms_top_n):
    # objectness: (N, total_anchors); per-level top-k like RPN._get_top_n_idx
    r = []
    offset = 0
    for n in num_anchors_per_level:
        ob = objectness[:, offset:offset + n]
        k = min(pre_nms_top_n, n)
        _, idx = lax.top_k(ob, k)
        r.append(idx + offset)
        offset += n
    return jnp.concatenate(r, axis=1)


def box_iou(boxes1, boxes2):
    area1 = (boxes1[:, 2] - boxes1[:, 0]) * (boxes1[:, 3] - boxes1[:, 1])
    area2 = (boxes2[:, 2] - boxes2[:, 0]) * (boxes2[:, 3] - boxes2[:, 1])
    lt = jnp.maximum(boxes1[:, None, :2], boxes2[None, :, :2])
    rb = jnp.minimum(boxes1[:, None, 2:], boxes2[None, :, 2:])
    wh = jnp.clip(rb - lt, 0.0)
    inter = wh[..., 0] * wh[..., 1]
    union = area1[:, None] + area2[None, :] - inter
    return inter / jnp.maximum(union, 1e-9)


def batched_nms_padded(boxes, scores, levels, valid, *, iou_thresh, max_out):
    # TODO(synk): greedy NMS is data-dependent sequential control flow; kept in
    # plain JAX (padded, fixed-size output) — no clean Pallas equivalent.
    P = boxes.shape[0]
    neg_inf = jnp.float32(-1e30)
    masked_scores = jnp.where(valid, scores, neg_inf)
    order = jnp.argsort(-masked_scores, stable=True)
    boxes_s = boxes[order]
    scores_s = masked_scores[order]
    levels_s = levels[order]

    max_coord = jnp.max(jnp.where(valid[:, None], boxes, 0.0))
    boxes_off = boxes_s + (levels_s.astype(jnp.float32) * (max_coord + 1.0))[:, None]
    ious = box_iou(boxes_off, boxes_off)
    valid_s = scores_s > neg_inf

    def body(i, keep):
        suppress = (jnp.arange(P) > i) & (ious[i] > iou_thresh) & keep[i]
        return keep & jnp.logical_not(suppress)

    keep = lax.fori_loop(0, P, body, valid_s)

    sel = jnp.argsort(jnp.logical_not(keep), stable=True)
    keep_o = keep[sel]
    boxes_o = jnp.where(keep_o[:, None], boxes_s[sel], 0.0)
    scores_o = jnp.where(keep_o, scores_s[sel], 0.0)
    return boxes_o[:max_out], scores_o[:max_out], keep_o[:max_out]


# ----------------------------------------------------------------------------
# Full forward (inference path; training losses not computed).
# ----------------------------------------------------------------------------
def rpn_forward(features, image_sizes, image_size, conv_w, conv_b,
                cls_w, cls_b, reg_w, reg_b, *, anchor_sizes, aspect_ratios,
                pre_nms_top_n, post_nms_top_n, nms_thresh, score_thresh,
                min_size):
    N, C, H, W = features.shape
    A = cls_w.shape[0]
    out_w = max(128, _round_up(7 * A, 128))
    img_h, img_w = image_size                 # static python ints (jit-safe)

    # ---- weight prep: bf16 matmul weights, f32 biases, fused cls+reg in a
    #      permuted SoA column layout [cls(A)|dx(A)|dy(A)|dw(A)|dh(A)|0...].
    w1 = jnp.transpose(conv_w, (2, 3, 1, 0)).astype(jnp.bfloat16)   # (3,3,Cin,Cout)
    b1 = conv_b.reshape(1, C).astype(jnp.float32)
    wc = cls_w.reshape(A, C).T                                       # (C, A)
    wr = reg_w.reshape(A, 4, C)                                      # (A, 4, C)
    w2 = jnp.concatenate(
        [wc] + [wr[:, j, :].T for j in range(4)]
        + [jnp.zeros((C, out_w - 5 * A), jnp.float32)],
        axis=1).astype(jnp.bfloat16)                                 # (C, out_w)
    rb = reg_b.reshape(A, 4)
    b2 = jnp.concatenate(
        [cls_b] + [rb[:, j] for j in range(4)]
        + [jnp.zeros((out_w - 5 * A,), jnp.float32)]).reshape(1, out_w)
    b2 = b2.astype(jnp.float32)

    # ---- feature prep: NCHW -> zero-padded NHWC -> 3 W-shifted, row-flattened
    #      bf16 copies (3x data, vs 9x for im2col; every kernel window is then
    #      a contiguous 2-D slice).
    xn = jnp.transpose(features, (0, 2, 3, 1))
    xp = jnp.pad(xn, ((0, 0), (1, 1), (1, 1), (0, 0)))
    x_shift = jnp.stack([xp[:, :, kx:kx + W, :] for kx in range(3)], axis=1)
    x_shift = x_shift.reshape(N, 3, (H + 2) * W, C).astype(jnp.bfloat16)

    # ---- anchors for the single feature level, SoA layout (H*W, 4A).
    stride_h, stride_w = img_h // H, img_w // W
    anchors = generate_anchors(anchor_sizes, aspect_ratios, H, W,
                               stride_h, stride_w)                   # (K, 4)
    K = anchors.shape[0]
    anchors_soa = anchors.reshape(H * W, A, 4).transpose(0, 2, 1) \
                         .reshape(H * W, 4 * A)

    # ---- fused head + decode (Pallas).
    out = run_rpn_fused(image_sizes.astype(jnp.int32), x_shift, w1, b1, w2, b2,
                        anchors_soa, H=H, W=W, C=C, A=A, out_w=out_w,
                        min_size=min_size, score_thresh=score_thresh)

    objectness = out[:, :, 0:A].reshape(N, K)
    probs = out[:, :, A:2 * A].reshape(N, K)
    masked = out[:, :, 2 * A:3 * A].reshape(N, K)
    boxes = out[:, :, 3 * A:7 * A].reshape(N, H * W, 4, A)
    boxes = jnp.transpose(boxes, (0, 1, 3, 2)).reshape(N, K, 4)

    # ---- per-level top-k on raw logits (matches torchvision), then gather.
    num_anchors_per_level = [K]
    top_idx = get_top_n_idx(objectness, num_anchors_per_level, pre_nms_top_n)
    levels = jnp.concatenate([jnp.full((n,), i, jnp.int32)
                              for i, n in enumerate(num_anchors_per_level)])
    levels = jnp.broadcast_to(levels[None, :], (N, K))

    boxes_sel = jnp.take_along_axis(boxes, top_idx[:, :, None], axis=1)
    probs_sel = jnp.take_along_axis(probs, top_idx, axis=1)
    masked_sel = jnp.take_along_axis(masked, top_idx, axis=1)
    levels_sel = jnp.take_along_axis(levels, top_idx, axis=1)
    valid_sel = masked_sel >= 0.0

    # ---- batched NMS + post_nms_top_n (glue, padded fixed-size outputs).
    nms_fn = partial(batched_nms_padded, iou_thresh=nms_thresh,
                     max_out=post_nms_top_n)
    final_boxes, final_scores, final_valid = jax.vmap(nms_fn)(
        boxes_sel, probs_sel, levels_sel, valid_sel)
    return final_boxes, final_scores, final_valid


if __name__ == "__main__":
    key = jax.random.PRNGKey(0)
    N, C, H, W = 2, 16, 8, 8        # single feature level
    A = 3                           # 3 aspect ratios, 1 size
    IMG_H, IMG_W = 64, 64

    k_feat, k_w1, k_wc, k_wr = jax.random.split(key, 4)
    features = jax.random.normal(k_feat, (N, C, H, W), jnp.float32)

    # RPNHead parameters (torchvision init: normal(std=0.01), zero biases)
    conv_w = 0.01 * jax.random.normal(k_w1, (C, C, 3, 3), jnp.float32)
    conv_b = jnp.zeros((C,), jnp.float32)
    cls_w = 0.01 * jax.random.normal(k_wc, (A, C, 1, 1), jnp.float32)
    cls_b = jnp.zeros((A,), jnp.float32)
    reg_w = 0.01 * jax.random.normal(k_wr, (4 * A, C, 1, 1), jnp.float32)
    reg_b = jnp.zeros((4 * A,), jnp.float32)

    image_sizes = jnp.array([[IMG_H, IMG_W]] * N, jnp.int32)

    boxes, scores, valid = rpn_forward(
        features, image_sizes, (IMG_H, IMG_W),
        conv_w, conv_b, cls_w, cls_b, reg_w, reg_b,
        anchor_sizes=(32.0,), aspect_ratios=(0.5, 1.0, 2.0),
        pre_nms_top_n=100, post_nms_top_n=50, nms_thresh=0.7,
        score_thresh=0.0, min_size=1.0)

    jax.block_until_ready((boxes, scores, valid))
    assert boxes.shape == (N, 50, 4) and scores.shape == (N, 50)
    print("KERNEL_OK")
</pallas_src>

<mosaic_0001>
module attributes {stable_mosaic.version = 11 : i64} {
  func.func @kernel(%arg0: i32, %arg1: memref<2x2xi32, #tpu.memory_space<smem>>, %arg2: memref<1x3x80x16xbf16, #tpu.memory_space<vmem>>, %arg3: memref<3x3x16x16xbf16, #tpu.memory_space<vmem>>, %arg4: memref<1x16xf32, #tpu.memory_space<vmem>>, %arg5: memref<16x128xbf16, #tpu.memory_space<vmem>>, %arg6: memref<1x128xf32, #tpu.memory_space<vmem>>, %arg7: memref<64x12xf32, #tpu.memory_space<vmem>>, %arg8: memref<1x64x128xf32, #tpu.memory_space<vmem>>) attributes {dimension_semantics = [#tpu.dimension_semantics<parallel>], iteration_bounds = array<i64: 2>, scalar_prefetch = 1 : i64, scratch_operands = 0 : i64, tpu.core_type = #tpu.core_type<tc>, window_params = [{transform_indices = @transform_0, window_bounds = array<i64: 1, 3, 80, 16>}, {pipeline_mode = #tpu.pipeline_mode<synchronous>, transform_indices = @transform_1, window_bounds = array<i64: 3, 3, 16, 16>}, {pipeline_mode = #tpu.pipeline_mode<synchronous>, transform_indices = @transform_2, window_bounds = array<i64: 1, 16>}, {pipeline_mode = #tpu.pipeline_mode<synchronous>, transform_indices = @transform_3, window_bounds = array<i64: 16, 128>}, {pipeline_mode = #tpu.pipeline_mode<synchronous>, transform_indices = @transform_4, window_bounds = array<i64: 1, 128>}, {pipeline_mode = #tpu.pipeline_mode<synchronous>, transform_indices = @transform_5, window_bounds = array<i64: 64, 12>}, {transform_indices = @transform_6, window_bounds = array<i64: 1, 64, 128>}]} {
    %0 = arith.index_cast %arg0 : i32 to index
    %c0 = arith.constant 0 : index
    %1 = memref.load %arg1[%0, %c0] : memref<2x2xi32, #tpu.memory_space<smem>>
    %2 = arith.sitofp %1 : i32 to f32
    %3 = arith.index_cast %arg0 : i32 to index
    %c1 = arith.constant 1 : index
    %4 = memref.load %arg1[%3, %c1] : memref<2x2xi32, #tpu.memory_space<smem>>
    %5 = arith.sitofp %4 : i32 to f32
    %cst = arith.constant 0.000000e+00 : f32
    %6 = vector.broadcast %cst : f32 to vector<64x16xf32>
    %c0_0 = arith.constant 0 : index
    %c0_1 = arith.constant 0 : index
    %c0_2 = arith.constant 0 : index
    %c0_3 = arith.constant 0 : index
    %7 = vector.load %arg2[%c0_0, %c0_1, %c0_2, %c0_3] : memref<1x3x80x16xbf16, #tpu.memory_space<vmem>>, vector<1x1x64x16xbf16>
    %8 = vector.shape_cast %7 : vector<1x1x64x16xbf16> to vector<64x16xbf16>
    %c0_4 = arith.constant 0 : index
    %c0_5 = arith.constant 0 : index
    %c0_6 = arith.constant 0 : index
    %c0_7 = arith.constant 0 : index
    %9 = vector.load %arg3[%c0_4, %c0_5, %c0_6, %c0_7] : memref<3x3x16x16xbf16, #tpu.memory_space<vmem>>, vector<1x1x16x16xbf16>
    %10 = vector.shape_cast %9 : vector<1x1x16x16xbf16> to vector<16x16xbf16>
    %cst_8 = arith.constant dense<0.000000e+00> : vector<64x16xf32>
    %11 = tpu.matmul %8, %10, %cst_8 {dimension_numbers = #tpu.dot_dimension_numbers<[1], [0], [0], [1], [0, 0, 1, 1], [], []>} : vector<64x16xbf16>, vector<16x16xbf16>, vector<64x16xf32> -> vector<64x16xf32>
    %12 = arith.addf %6, %11 : vector<64x16xf32>
    %c0_9 = arith.constant 0 : index
    %c0_10 = arith.constant 0 : index
    %c8 = arith.constant 8 : index
    %c0_11 = arith.constant 0 : index
    %13 = vector.load %arg2[%c0_9, %c0_10, %c8, %c0_11] : memref<1x3x80x16xbf16, #tpu.memory_space<vmem>>, vector<1x1x64x16xbf16>
    %14 = vector.shape_cast %13 : vector<1x1x64x16xbf16> to vector<64x16xbf16>
    %c1_12 = arith.constant 1 : index
    %c0_13 = arith.constant 0 : index
    %c0_14 = arith.constant 0 : index
    %c0_15 = arith.constant 0 : index
    %15 = vector.load %arg3[%c1_12, %c0_13, %c0_14, %c0_15] : memref<3x3x16x16xbf16, #tpu.memory_space<vmem>>, vector<1x1x16x16xbf16>
    %16 = vector.shape_cast %15 : vector<1x1x16x16xbf16> to vector<16x16xbf16>
    %cst_16 = arith.constant dense<0.000000e+00> : vector<64x16xf32>
    %17 = tpu.matmul %14, %16, %cst_16 {dimension_numbers = #tpu.dot_dimension_numbers<[1], [0], [0], [1], [0, 0, 1, 1], [], []>} : vector<64x16xbf16>, vector<16x16xbf16>, vector<64x16xf32> -> vector<64x16xf32>
    %18 = arith.addf %12, %17 : vector<64x16xf32>
    %c0_17 = arith.constant 0 : index
    %c0_18 = arith.constant 0 : index
    %c16 = arith.constant 16 : index
    %c0_19 = arith.constant 0 : index
    %19 = vector.load %arg2[%c0_17, %c0_18, %c16, %c0_19] : memref<1x3x80x16xbf16, #tpu.memory_space<vmem>>, vector<1x1x64x16xbf16>
    %20 = vector.shape_cast %19 : vector<1x1x64x16xbf16> to vector<64x16xbf16>
    %c2 = arith.constant 2 : index
    %c0_20 = arith.constant 0 : index
    %c0_21 = arith.constant 0 : index
    %c0_22 = arith.constant 0 : index
    %21 = vector.load %arg3[%c2, %c0_20, %c0_21, %c0_22] : memref<3x3x16x16xbf16, #tpu.memory_space<vmem>>, vector<1x1x16x16xbf16>
    %22 = vector.shape_cast %21 : vector<1x1x16x16xbf16> to vector<16x16xbf16>
    %cst_23 = arith.constant dense<0.000000e+00> : vector<64x16xf32>
    %23 = tpu.matmul %20, %22, %cst_23 {dimension_numbers = #tpu.dot_dimension_numbers<[1], [0], [0], [1], [0, 0, 1, 1], [], []>} : vector<64x16xbf16>, vector<16x16xbf16>, vector<64x16xf32> -> vector<64x16xf32>
    %24 = arith.addf %18, %23 : vector<64x16xf32>
    %c0_24 = arith.constant 0 : index
    %c1_25 = arith.constant 1 : index
    %c0_26 = arith.constant 0 : index
    %c0_27 = arith.constant 0 : index
    %25 = vector.load %arg2[%c0_24, %c1_25, %c0_26, %c0_27] : memref<1x3x80x16xbf16, #tpu.memory_space<vmem>>, vector<1x1x64x16xbf16>
    %26 = vector.shape_cast %25 : vector<1x1x64x16xbf16> to vector<64x16xbf16>
    %c0_28 = arith.constant 0 : index
    %c1_29 = arith.constant 1 : index
    %c0_30 = arith.constant 0 : index
    %c0_31 = arith.constant 0 : index
    %27 = vector.load %arg3[%c0_28, %c1_29, %c0_30, %c0_31] : memref<3x3x16x16xbf16, #tpu.memory_space<vmem>>, vector<1x1x16x16xbf16>
    %28 = vector.shape_cast %27 : vector<1x1x16x16xbf16> to vector<16x16xbf16>
    %cst_32 = arith.constant dense<0.000000e+00> : vector<64x16xf32>
    %29 = tpu.matmul %26, %28, %cst_32 {dimension_numbers = #tpu.dot_dimension_numbers<[1], [0], [0], [1], [0, 0, 1, 1], [], []>} : vector<64x16xbf16>, vector<16x16xbf16>, vector<64x16xf32> -> vector<64x16xf32>
    %30 = arith.addf %24, %29 : vector<64x16xf32>
    %c0_33 = arith.constant 0 : index
    %c1_34 = arith.constant 1 : index
    %c8_35 = arith.constant 8 : index
    %c0_36 = arith.constant 0 : index
    %31 = vector.load %arg2[%c0_33, %c1_34, %c8_35, %c0_36] : memref<1x3x80x16xbf16, #tpu.memory_space<vmem>>, vector<1x1x64x16xbf16>
    %32 = vector.shape_cast %31 : vector<1x1x64x16xbf16> to vector<64x16xbf16>
    %c1_37 = arith.constant 1 : index
    %c1_38 = arith.constant 1 : index
    %c0_39 = arith.constant 0 : index
    %c0_40 = arith.constant 0 : index
    %33 = vector.load %arg3[%c1_37, %c1_38, %c0_39, %c0_40] : memref<3x3x16x16xbf16, #tpu.memory_space<vmem>>, vector<1x1x16x16xbf16>
    %34 = vector.shape_cast %33 : vector<1x1x16x16xbf16> to vector<16x16xbf16>
    %cst_41 = arith.constant dense<0.000000e+00> : vector<64x16xf32>
    %35 = tpu.matmul %32, %34, %cst_41 {dimension_numbers = #tpu.dot_dimension_numbers<[1], [0], [0], [1], [0, 0, 1, 1], [], []>} : vector<64x16xbf16>, vector<16x16xbf16>, vector<64x16xf32> -> vector<64x16xf32>
    %36 = arith.addf %30, %35 : vector<64x16xf32>
    %c0_42 = arith.constant 0 : index
    %c1_43 = arith.constant 1 : index
    %c16_44 = arith.constant 16 : index
    %c0_45 = arith.constant 0 : index
    %37 = vector.load %arg2[%c0_42, %c1_43, %c16_44, %c0_45] : memref<1x3x80x16xbf16, #tpu.memory_space<vmem>>, vector<1x1x64x16xbf16>
    %38 = vector.shape_cast %37 : vector<1x1x64x16xbf16> to vector<64x16xbf16>
    %c2_46 = arith.constant 2 : index
    %c1_47 = arith.constant 1 : index
    %c0_48 = arith.constant 0 : index
    %c0_49 = arith.constant 0 : index
    %39 = vector.load %arg3[%c2_46, %c1_47, %c0_48, %c0_49] : memref<3x3x16x16xbf16, #tpu.memory_space<vmem>>, vector<1x1x16x16xbf16>
    %40 = vector.shape_cast %39 : vector<1x1x16x16xbf16> to vector<16x16xbf16>
    %cst_50 = arith.constant dense<0.000000e+00> : vector<64x16xf32>
    %41 = tpu.matmul %38, %40, %cst_50 {dimension_numbers = #tpu.dot_dimension_numbers<[1], [0], [0], [1], [0, 0, 1, 1], [], []>} : vector<64x16xbf16>, vector<16x16xbf16>, vector<64x16xf32> -> vector<64x16xf32>
    %42 = arith.addf %36, %41 : vector<64x16xf32>
    %c0_51 = arith.constant 0 : index
    %c2_52 = arith.constant 2 : index
    %c0_53 = arith.constant 0 : index
    %c0_54 = arith.constant 0 : index
    %43 = vector.load %arg2[%c0_51, %c2_52, %c0_53, %c0_54] : memref<1x3x80x16xbf16, #tpu.memory_space<vmem>>, vector<1x1x64x16xbf16>
    %44 = vector.shape_cast %43 : vector<1x1x64x16xbf16> to vector<64x16xbf16>
    %c0_55 = arith.constant 0 : index
    %c2_56 = arith.constant 2 : index
    %c0_57 = arith.constant 0 : index
    %c0_58 = arith.constant 0 : index
    %45 = vector.load %arg3[%c0_55, %c2_56, %c0_57, %c0_58] : memref<3x3x16x16xbf16, #tpu.memory_space<vmem>>, vector<1x1x16x16xbf16>
    %46 = vector.shape_cast %45 : vector<1x1x16x16xbf16> to vector<16x16xbf16>
    %cst_59 = arith.constant dense<0.000000e+00> : vector<64x16xf32>
    %47 = tpu.matmul %44, %46, %cst_59 {dimension_numbers = #tpu.dot_dimension_numbers<[1], [0], [0], [1], [0, 0, 1, 1], [], []>} : vector<64x16xbf16>, vector<16x16xbf16>, vector<64x16xf32> -> vector<64x16xf32>
    %48 = arith.addf %42, %47 : vector<64x16xf32>
    %c0_60 = arith.constant 0 : index
    %c2_61 = arith.constant 2 : index
    %c8_62 = arith.constant 8 : index
    %c0_63 = arith.constant 0 : index
    %49 = vector.load %arg2[%c0_60, %c2_61, %c8_62, %c0_63] : memref<1x3x80x16xbf16, #tpu.memory_space<vmem>>, vector<1x1x64x16xbf16>
    %50 = vector.shape_cast %49 : vector<1x1x64x16xbf16> to vector<64x16xbf16>
    %c1_64 = arith.constant 1 : index
    %c2_65 = arith.constant 2 : index
    %c0_66 = arith.constant 0 : index
    %c0_67 = arith.constant 0 : index
    %51 = vector.load %arg3[%c1_64, %c2_65, %c0_66, %c0_67] : memref<3x3x16x16xbf16, #tpu.memory_space<vmem>>, vector<1x1x16x16xbf16>
    %52 = vector.shape_cast %51 : vector<1x1x16x16xbf16> to vector<16x16xbf16>
    %cst_68 = arith.constant dense<0.000000e+00> : vector<64x16xf32>
    %53 = tpu.matmul %50, %52, %cst_68 {dimension_numbers = #tpu.dot_dimension_numbers<[1], [0], [0], [1], [0, 0, 1, 1], [], []>} : vector<64x16xbf16>, vector<16x16xbf16>, vector<64x16xf32> -> vector<64x16xf32>
    %54 = arith.addf %48, %53 : vector<64x16xf32>
    %c0_69 = arith.constant 0 : index
    %c2_70 = arith.constant 2 : index
    %c16_71 = arith.constant 16 : index
    %c0_72 = arith.constant 0 : index
    %55 = vector.load %arg2[%c0_69, %c2_70, %c16_71, %c0_72] : memref<1x3x80x16xbf16, #tpu.memory_space<vmem>>, vector<1x1x64x16xbf16>
    %56 = vector.shape_cast %55 : vector<1x1x64x16xbf16> to vector<64x16xbf16>
    %c2_73 = arith.constant 2 : index
    %c2_74 = arith.constant 2 : index
    %c0_75 = arith.constant 0 : index
    %c0_76 = arith.constant 0 : index
    %57 = vector.load %arg3[%c2_73, %c2_74, %c0_75, %c0_76] : memref<3x3x16x16xbf16, #tpu.memory_space<vmem>>, vector<1x1x16x16xbf16>
    %58 = vector.shape_cast %57 : vector<1x1x16x16xbf16> to vector<16x16xbf16>
    %cst_77 = arith.constant dense<0.000000e+00> : vector<64x16xf32>
    %59 = tpu.matmul %56, %58, %cst_77 {dimension_numbers = #tpu.dot_dimension_numbers<[1], [0], [0], [1], [0, 0, 1, 1], [], []>} : vector<64x16xbf16>, vector<16x16xbf16>, vector<64x16xf32> -> vector<64x16xf32>
    %60 = arith.addf %54, %59 : vector<64x16xf32>
    %c0_78 = arith.constant 0 : index
    %c0_79 = arith.constant 0 : index
    %61 = vector.load %arg4[%c0_78, %c0_79] : memref<1x16xf32, #tpu.memory_space<vmem>>, vector<1x16xf32>
    %62 = vector.broadcast %61 : vector<1x16xf32> to vector<64x16xf32>
    %63 = arith.addf %60, %62 : vector<64x16xf32>
    %cst_80 = arith.constant 0.000000e+00 : f32
    %64 = vector.broadcast %cst_80 : f32 to vector<64x16xf32>
    %65 = arith.maximumf %63, %64 : vector<64x16xf32>
    %66 = arith.truncf %65 : vector<64x16xf32> to vector<64x16xbf16>
    %c0_81 = arith.constant 0 : index
    %c0_82 = arith.constant 0 : index
    %67 = vector.load %arg5[%c0_81, %c0_82] : memref<16x128xbf16, #tpu.memory_space<vmem>>, vector<16x128xbf16>
    %cst_83 = arith.constant dense<0.000000e+00> : vector<64x128xf32>
    %68 = tpu.matmul %66, %67, %cst_83 {dimension_numbers = #tpu.dot_dimension_numbers<[1], [0], [0], [1], [0, 0, 1, 1], [], []>} : vector<64x16xbf16>, vector<16x128xbf16>, vector<64x128xf32> -> vector<64x128xf32>
    %c0_84 = arith.constant 0 : index
    %c0_85 = arith.constant 0 : index
    %69 = vector.load %arg6[%c0_84, %c0_85] : memref<1x128xf32, #tpu.memory_space<vmem>>, vector<1x128xf32>
    %70 = vector.broadcast %69 : vector<1x128xf32> to vector<64x128xf32>
    %71 = arith.addf %68, %70 : vector<64x128xf32>
    %72 = vector.extract_strided_slice %71 {offsets = [0, 0], sizes = [64, 3], strides = [1, 1]} : vector<64x128xf32> to vector<64x3xf32>
    %73 = vector.extract_strided_slice %71 {offsets = [0, 3], sizes = [64, 3], strides = [1, 1]} : vector<64x128xf32> to vector<64x3xf32>
    %74 = vector.extract_strided_slice %71 {offsets = [0, 6], sizes = [64, 3], strides = [1, 1]} : vector<64x128xf32> to vector<64x3xf32>
    %75 = vector.extract_strided_slice %71 {offsets = [0, 9], sizes = [64, 3], strides = [1, 1]} : vector<64x128xf32> to vector<64x3xf32>
    %cst_86 = arith.constant 4.13516665 : f32
    %76 = vector.broadcast %cst_86 : f32 to vector<64x3xf32>
    %77 = arith.minimumf %75, %76 : vector<64x3xf32>
    %78 = vector.extract_strided_slice %71 {offsets = [0, 12], sizes = [64, 3], strides = [1, 1]} : vector<64x128xf32> to vector<64x3xf32>
    %cst_87 = arith.constant 4.13516665 : f32
    %79 = vector.broadcast %cst_87 : f32 to vector<64x3xf32>
    %80 = arith.minimumf %78, %79 : vector<64x3xf32>
    %c0_88 = arith.constant 0 : index
    %c0_89 = arith.constant 0 : index
    %81 = vector.load %arg7[%c0_88, %c0_89] : memref<64x12xf32, #tpu.memory_space<vmem>>, vector<64x12xf32>
    %82 = vector.extract_strided_slice %81 {offsets = [0, 0], sizes = [64, 3], strides = [1, 1]} : vector<64x12xf32> to vector<64x3xf32>
    %83 = vector.extract_strided_slice %81 {offsets = [0, 3], sizes = [64, 3], strides = [1, 1]} : vector<64x12xf32> to vector<64x3xf32>
    %84 = vector.extract_strided_slice %81 {offsets = [0, 6], sizes = [64, 3], strides = [1, 1]} : vector<64x12xf32> to vector<64x3xf32>
    %85 = vector.extract_strided_slice %81 {offsets = [0, 9], sizes = [64, 3], strides = [1, 1]} : vector<64x12xf32> to vector<64x3xf32>
    %86 = arith.subf %84, %82 : vector<64x3xf32>
    %87 = arith.subf %85, %83 : vector<64x3xf32>
    %cst_90 = arith.constant 5.000000e-01 : f32
    %88 = vector.broadcast %cst_90 : f32 to vector<64x3xf32>
    %89 = arith.mulf %88, %86 : vector<64x3xf32>
    %90 = arith.addf %82, %89 : vector<64x3xf32>
    %cst_91 = arith.constant 5.000000e-01 : f32
    %91 = vector.broadcast %cst_91 : f32 to vector<64x3xf32>
    %92 = arith.mulf %91, %87 : vector<64x3xf32>
    %93 = arith.addf %83, %92 : vector<64x3xf32>
    %94 = arith.mulf %73, %86 : vector<64x3xf32>
    %95 = arith.addf %94, %90 : vector<64x3xf32>
    %96 = arith.mulf %74, %87 : vector<64x3xf32>
    %97 = arith.addf %96, %93 : vector<64x3xf32>
    %98 = math.exp %77 : vector<64x3xf32>
    %99 = arith.mulf %98, %86 : vector<64x3xf32>
    %100 = math.exp %80 : vector<64x3xf32>
    %101 = arith.mulf %100, %87 : vector<64x3xf32>
    %cst_92 = arith.constant 5.000000e-01 : f32
    %102 = vector.broadcast %cst_92 : f32 to vector<64x3xf32>
    %103 = arith.mulf %102, %99 : vector<64x3xf32>
    %104 = arith.subf %95, %103 : vector<64x3xf32>
    %cst_93 = arith.constant 0.000000e+00 : f32
    %105 = vector.broadcast %cst_93 : f32 to vector<64x3xf32>
    %106 = arith.maximumf %105, %104 : vector<64x3xf32>
    %107 = vector.broadcast %5 : f32 to vector<64x3xf32>
    %108 = arith.minimumf %107, %106 : vector<64x3xf32>
    %cst_94 = arith.constant 5.000000e-01 : f32
    %109 = vector.broadcast %cst_94 : f32 to vector<64x3xf32>
    %110 = arith.mulf %109, %99 : vector<64x3xf32>
    %111 = arith.addf %95, %110 : vector<64x3xf32>
    %cst_95 = arith.constant 0.000000e+00 : f32
    %112 = vector.broadcast %cst_95 : f32 to vector<64x3xf32>
    %113 = arith.maximumf %112, %111 : vector<64x3xf32>
    %114 = vector.broadcast %5 : f32 to vector<64x3xf32>
    %115 = arith.minimumf %114, %113 : vector<64x3xf32>
    %cst_96 = arith.constant 5.000000e-01 : f32
    %116 = vector.broadcast %cst_96 : f32 to vector<64x3xf32>
    %117 = arith.mulf %116, %101 : vector<64x3xf32>
    %118 = arith.subf %97, %117 : vector<64x3xf32>
    %cst_97 = arith.constant 0.000000e+00 : f32
    %119 = vector.broadcast %cst_97 : f32 to vector<64x3xf32>
    %120 = arith.maximumf %119, %118 : vector<64x3xf32>
    %121 = vector.broadcast %2 : f32 to vector<64x3xf32>
    %122 = arith.minimumf %121, %120 : vector<64x3xf32>
    %cst_98 = arith.constant 5.000000e-01 : f32
    %123 = vector.broadcast %cst_98 : f32 to vector<64x3xf32>
    %124 = arith.mulf %123, %101 : vector<64x3xf32>
    %125 = arith.addf %97, %124 : vector<64x3xf32>
    %cst_99 = arith.constant 0.000000e+00 : f32
    %126 = vector.broadcast %cst_99 : f32 to vector<64x3xf32>
    %127 = arith.maximumf %126, %125 : vector<64x3xf32>
    %128 = vector.broadcast %2 : f32 to vector<64x3xf32>
    %129 = arith.minimumf %128, %127 : vector<64x3xf32>
    %cst_100 = arith.constant 0.000000e+00 : f32
    %130 = vector.broadcast %cst_100 : f32 to vector<64x3xf32>
    %131 = arith.subf %130, %72 : vector<64x3xf32>
    %132 = math.exp %131 : vector<64x3xf32>
    %cst_101 = arith.constant 1.000000e+00 : f32
    %133 = vector.broadcast %cst_101 : f32 to vector<64x3xf32>
    %134 = arith.addf %133, %132 : vector<64x3xf32>
    %cst_102 = arith.constant 1.000000e+00 : f32
    %135 = vector.broadcast %cst_102 : f32 to vector<64x3xf32>
    %136 = arith.divf %135, %134 : vector<64x3xf32>
    %137 = arith.subf %115, %108 : vector<64x3xf32>
    %cst_103 = arith.constant 1.000000e+00 : f32
    %138 = vector.broadcast %cst_103 : f32 to vector<64x3xf32>
    %139 = arith.cmpf oge, %137, %138 : vector<64x3xf32>
    %140 = arith.subf %129, %122 : vector<64x3xf32>
    %cst_104 = arith.constant 1.000000e+00 : f32
    %141 = vector.broadcast %cst_104 : f32 to vector<64x3xf32>
    %142 = arith.cmpf oge, %140, %141 : vector<64x3xf32>
    %143 = arith.andi %139, %142 : vector<64x3xi1>
    %cst_105 = arith.constant 0.000000e+00 : f32
    %144 = vector.broadcast %cst_105 : f32 to vector<64x3xf32>
    %145 = arith.cmpf oge, %136, %144 : vector<64x3xf32>
    %146 = arith.andi %143, %145 : vector<64x3xi1>
    %cst_106 = arith.constant -1.000000e+00 : f32
    %147 = vector.broadcast %cst_106 : f32 to vector<64x3xf32>
    %148 = arith.select %146, %136, %147 : vector<64x3xi1>, vector<64x3xf32>
    %cst_107 = arith.constant 0.000000e+00 : f32
    %149 = vector.broadcast %cst_107 : f32 to vector<64x107xf32>
    %150 = tpu.concatenate %72, %136, %148, %108, %122, %115, %129, %149 in 1 : vector<64x3xf32>, vector<64x3xf32>, vector<64x3xf32>, vector<64x3xf32>, vector<64x3xf32>, vector<64x3xf32>, vector<64x3xf32>, vector<64x107xf32> -> vector<64x128xf32>
    %c0_108 = arith.constant 0 : index
    %c0_109 = arith.constant 0 : index
    %c0_110 = arith.constant 0 : index
    %151 = vector.load %arg8[%c0_108, %c0_109, %c0_110] : memref<1x64x128xf32, #tpu.memory_space<vmem>>, vector<1x64x128xf32>
    %152 = vector.shape_cast %151 : vector<1x64x128xf32> to vector<64x128xf32>
    %153 = vector.shape_cast %150 : vector<64x128xf32> to vector<1x64x128xf32>
    tpu.vector_store %arg8[%c0_108, %c0_109, %c0_110], %153 {strides = array<i32>} : memref<1x64x128xf32, #tpu.memory_space<vmem>>, vector<1x64x128xf32>,
    return
  }
  func.func @transform_0(%arg0: i32, %arg1: memref<2x2xi32, #tpu.memory_space<smem>>) -> (i32, i32, i32, i32) {
    %c0_i32 = arith.constant 0 : i32
    %c0_i32_0 = arith.constant 0 : i32
    %c0_i32_1 = arith.constant 0 : i32
    %c0_i32_2 = arith.constant 0 : i32
    return %arg0, %c0_i32, %c0_i32_0, %c0_i32_1 : i32, i32, i32, i32
  }
  func.func @transform_1(%arg0: i32, %arg1: memref<2x2xi32, #tpu.memory_space<smem>>) -> (i32, i32, i32, i32) {
    %c0_i32 = arith.constant 0 : i32
    %c0_i32_0 = arith.constant 0 : i32
    %c0_i32_1 = arith.constant 0 : i32
    %c0_i32_2 = arith.constant 0 : i32
    %c0_i32_3 = arith.constant 0 : i32
    return %c0_i32, %c0_i32_0, %c0_i32_1, %c0_i32_2 : i32, i32, i32, i32
  }
  func.func @transform_2(%arg0: i32, %arg1: memref<2x2xi32, #tpu.memory_space<smem>>) -> (i32, i32) {
    %c0_i32 = arith.constant 0 : i32
    %c0_i32_0 = arith.constant 0 : i32
    %c0_i32_1 = arith.constant 0 : i32
    return %c0_i32, %c0_i32_0 : i32, i32
  }
  func.func @transform_3(%arg0: i32, %arg1: memref<2x2xi32, #tpu.memory_space<smem>>) -> (i32, i32) {
    %c0_i32 = arith.constant 0 : i32
    %c0_i32_0 = arith.constant 0 : i32
    %c0_i32_1 = arith.constant 0 : i32
    return %c0_i32, %c0_i32_0 : i32, i32
  }
  func.func @transform_4(%arg0: i32, %arg1: memref<2x2xi32, #tpu.memory_space<smem>>) -> (i32, i32) {
    %c0_i32 = arith.constant 0 : i32
    %c0_i32_0 = arith.constant 0 : i32
    %c0_i32_1 = arith.constant 0 : i32
    return %c0_i32, %c0_i32_0 : i32, i32
  }
  func.func @transform_5(%arg0: i32, %arg1: memref<2x2xi32, #tpu.memory_space<smem>>) -> (i32, i32) {
    %c0_i32 = arith.constant 0 : i32
    %c0_i32_0 = arith.constant 0 : i32
    %c0_i32_1 = arith.constant 0 : i32
    return %c0_i32, %c0_i32_0 : i32, i32
  }
  func.func @transform_6(%arg0: i32, %arg1: memref<2x2xi32, #tpu.memory_space<smem>>) -> (i32, i32, i32) {
    %c0_i32 = arith.constant 0 : i32
    %c0_i32_0 = arith.constant 0 : i32
    %c0_i32_1 = arith.constant 0 : i32
    return %arg0, %c0_i32, %c0_i32_0 : i32, i32, i32
  }
}

</mosaic_0001>

<bundles_post_ra>
// kernel: tpu_custom_call.1
= control target key start
LH: loop header
LB: loop body
LE: loop exit
PB: predicated region body
PF: predicated region fallthrough
CT: control target
= control target key end

     0   :  { %s2574_s27 = smov [#allocation3]   ;;  %s3604_s0 = inlined_call_operand.vmem [shape: s32[2,2], index: 0, kind: input, shape index: {}]   ;;  %s3605_s1 = inlined_call_operand.vmem [shape: bf16[2,3,80,16], index: 1, kind: input, shape index: {}]   ;;  %s3606_s2 = inlined_call_operand.vmem [shape: bf16[3,3,16,16], index: 2, kind: input, shape index: {}]   ;;  %s3607_s3 = inlined_call_operand.vmem [shape: f32[1,16], index: 3, kind: input, shape index: {}]   ;;  %s3608_s4 = inlined_call_operand.vmem [shape: bf16[16,128], index: 4, kind: input, shape index: {}]   ;;  %s3609_s5 = inlined_call_operand.vmem [shape: f32[1,128], index: 5, kind: input, shape index: {}]   ;;  %s3610_s6 = inlined_call_operand.vmem [shape: f32[64,12], index: 6, kind: input, shape index: {}]   ;;  %s3611_s7 = inlined_call_operand.hbm [shape: f32[2,64,128], index: 7, kind: output, shape index: {}]  }
   0x1   :  { %s13_s26 = sshll.u32 %s3604_s0, 4  ;;  %s14_s26 = int_to_ptr.vmem [resolvable:$true] %s13_s26 }
   0x2   :  { %16 = dma.vmem_to_smem %s14_s26, 32, %s2574_s27, [#allocation2] }
   0x3   :  { %2552 = dma.done.wait [#allocation2], 32 }
   0x4   :  { %2553 = vsyncadd [#allocation2], 4294967264 }
   0x5   :  { %19 = sfence }
   0x6   :  { %20 = vsyncpa [#allocation5], 0 }
   0x7   :  { %22 = vsyncpa [#allocation5 + $0x1], 0  ;;  %s2626_s28 = smov 0   ;;  %s2628_s29 = smov 0  }
   0x8   :  { %s2630_s30 = smov 0   ;;  %s2632_s8 = smov 0  }
   0x9 LB: > { %s2647_s0 = sadd.s32 4294967295, %s2572_s8   ;;  %s2041_s9 = sadd.s32 4294967294, %s2572_s8   ;;  %s2572_s8 = sphi %s2632_s8, %s3617_s8   ;;  %s2568_s30 = sphi %s2630_s30, %s3616_s30   ;;  %s2564_s29 = sphi %s2628_s29, %s3615_s29   ;;  %s2560_s28 = sphi %s2626_s28, %s3614_s28  }
   0xa   : > { %s2651_s10 = sadd.s32 1, %s2572_s8   ;;  %s166_s11 = sadd.s32 1, %s2568_s30 }
   0xb   : > { %s163_s12 = ssub.s32 %s2572_s8, %s2651_s10  ;;  %p176_p0 = scmp.ne.s32.totalorder %s2568_s30, %s2564_s29 }
   0xc   : > { %p164_p1 = scmp.eq.s32.totalorder %s163_s12, 0  ;;  %p177_p2 = scmp.eq.s32.totalorder %s2647_s0, 1 }
   0xd   : > { %p182_p3 = scmp.ne.s32.totalorder %s2564_s29, %s2560_s28  ;;  %p183_p4 = scmp.eq.s32.totalorder %s2041_s9, 1 }
   0xe   : > { %s2662_s13 = scalar_select %p164_p1, %s2568_s30, %s166_s11  }
   0xf   : > { %p2664_p5 = por %p177_p2, %p176_p0  ;;  %p2668_p6 = por %p183_p4, %p182_p3 }
  0x10   : > { %p2044_p7 = scmp.ge.s32.totalorder %s2572_s8, 1  ;;  %p224_p8 = scmp.lt.s32.totalorder %s2572_s8, 3 }
  0x12   : > { %p225_p9 = pnand %p2044_p7, %p224_p8 }
  0x13   : > { %p254_p10 = scmp.lt.s32.totalorder (!%p225_p9), %s2647_s0, 1  ;;  %s2575_s22 = smov (!%p225_p9), 6  }
  0x14   : > { %228 = sbr.rel (%p225_p9) target bundleno = 867 (0x363), region = 44  ;;  %s2576_s11 = smov (!%p225_p9), 125  }
  0x15   : > { %s2577_s12 = smov (!%p225_p9), 3   ;;  %s2047_s24 = sshll.u32 (!%p225_p9), %s2647_s0, 7 }
  0x16   : > { %s263_s25 = sadd.s32 (!%p225_p9), 1, %s2047_s24  ;;  %s261_s9 = sld [smem:[#allocation3 + %s2047_s24]] (!%p225_p9) }
  0x17   : > { %s264_s26 = sld [smem:[#allocation3 + %s263_s25]] (!%p225_p9)  ;;  %s2580_s16 = smov (!%p225_p9), 12  }
  0x18   : > { %s2347_s17 = sshll.u32 (!%p225_p9), %s2647_s0, 6 }
  0x19   : > { %v2309_v0 = vld [vmem:[%s3606_s2] sm:$0xff]  ;;  %v2680_v1 = vld [vmem:[%s3610_s6 + $0x10] sm:$0xff]  ;;  %v2310_v3 = vld [vmem:[%s3606_s2 + $0x18] sm:$0xff]  ;;  %s255_s27 = scalar_select %p254_p10, %s2647_s0, 1  ;;  %vm306_vm0 = vcmask 130048  }
  0x1a   : > { %v2685_v2 = vld [vmem:[%s3610_s6] sm:$0xff]  ;;  %1110 = vrot.lane.b32.xlu1 %v2680_v1, %s2575_s22  ;;  %v2315_v4 = vld [vmem:[%s3606_s2 + $0x30] sm:$0xff]  ;;  %2388 = vmatpush.bf16.msra.mxu3 %v2309_v0  ;;  %v2320_v5 = vld [vmem:[%s3606_s2 + $0x8] sm:$0xff] }
  0x1b   : > { %1106 = vrot.lane.b32.xlu0 %v2685_v2, %s2575_s22  ;;  %379 = vmatpush.bf16.msra.mxu1 %v2309_v0  ;;  %v2325_v6 = vld [vmem:[%s3606_s2 + $0x20] sm:$0xff]  ;;  %s2397_s19 = smul.u32 120, %s255_s27  ;;  %v2720_v8 = vld [vmem:[%s3610_s6 + $0x8] sm:$0xff]  ;;  %v2730_v13 = vld [vmem:[%s3610_s6 + $0x18] sm:$0xff] }
  0x1c   : > { %2387 = vmatpush.bf16.msra.mxu2 %v2310_v3  ;;  %326 = vmatpush.bf16.msra.mxu0 %v2310_v3  ;;  %v2708_v7 = vld [vmem:[%s3610_s6 + $0x20] sm:$0xff]  ;;  %v2740_v14 = vld [vmem:[%s3610_s6 + $0x28] sm:$0xff]  ;;  %v2335_v15 = vld [vmem:[%s3606_s2 + $0x10] sm:$0xff] }
  0x1d   : > { %1114 = vrot.lane.b32.xlu2 %v2708_v7, %s2575_s22  ;;  %s2715_s23 = scalar_lea.vmem %s3605_s1, %s2397_s19  ;;  %v2340_v16 = vld [vmem:[%s3606_s2 + $0x28] sm:$0xff]  ;;  %v2330_v17 = vld [vmem:[%s3606_s2 + $0x38] sm:$0xff]  ;;  %v2345_v18 = vld [vmem:[%s3606_s2 + $0x40] sm:$0xff]  ;;  %s265_s27 = scvt.s32.f32 %s264_s26 }
  0x1e   : > { %544 = vmatpush.bf16.msrb.mxu3 %v2320_v5  ;;  %v2365_v9 = vld [vmem:[%s2715_s23 + $0x10] sm:$0xff]   ;;  %v2391_v11 = vld [vmem:[%s2715_s23 + $0x4] sm:$0xff]   ;;  %v2766_v20 = vld [vmem:[%s3610_s6 + $0x38] sm:$0xff]  ;;  %s1975_s19 = scalar_lea.hbm %s3611_s7, %s2347_s17 }
  0x1f   : > { %v2395_v10 = vld [vmem:[%s2715_s23 + $0x14] sm:$0xff]   ;;  %2064 = vmatmul.msk.bf16.vlgmr.msra.gmra.mxu3 %vm306_vm0, %v2365_v9  ;;  %v2349_v12 = vld [vmem:[%s2715_s23] sm:$0xff]   ;;  %2054 = vmatmul.msk.bf16.vlgmr.msra.gmra.mxu0 %vm306_vm0, %v2391_v11  ;;  %v2393_v23 = vld [vmem:[%s2715_s23 + $0xc] sm:$0xff]   ;;  %s1978_s21 = sshll.u32 %s1975_s19, 4  ;;  %s1979_s21 = int_to_ptr.hbm [resolvable:$true] %s1978_s21 }
  0x20   : > { %457 = vmatpush.bf16.msrb.mxu2 %v2315_v4  ;;  %630 = vmatpush.bf16.msrb.mxu0 %v2325_v6  ;;  %v2761_v19 = vld [vmem:[%s3610_s6 + $0x30] sm:$0xff]  ;;  %v2366_v21 = vld [vmem:[%s2715_s23 + $0x18] sm:$0xff]   ;;  %v2364_v24 = vld [vmem:[%s2715_s23 + $0x8] sm:$0xff]   ;;  %s2522_s25 = sshra.s32 %s1979_s21, 4  ;;  %s2523_s25 = int_to_ptr.hbm [resolvable:$true] %s2522_s25 }
  0x21   : > { %2056 = vmatmul.msk.bf16.vlgmr.msra.gmra.mxu2 %vm306_vm0, %v2395_v10  ;;  %2062 = vmatmul.msk.bf16.vlgmr.msra.gmra.mxu1 %vm306_vm0, %v2349_v12  ;;  %v2396_v22 = vld [vmem:[%s2715_s23 + $0x1c] sm:$0xff]  ;;  %v2316_v25 = vld [vmem:[%s2715_s23 + $0x28] sm:$0xff]  ;;  %v2326_v28 = vld [vmem:[%s2715_s23 + $0x30] sm:$0xff]  ;;  %s2524_s26 = scalar_lea.hbm %s2523_s25, 64  ;;  %p2529_p0 = scmp.lt.s32.totalorder %s2523_s25, %s3611_s7 }
  0x22   : > { %1112 = vrot.lane.b32.xlu1 %v2730_v13, %s2575_s22  ;;  %889 = vmatpush.bf16.msra.mxu3 %v2340_v16  ;;  %v2311_v26 = vld [vmem:[%s2715_s23 + $0x8] sm:$0xff]  ;;  %v2317_v29 = vld [vmem:[%s2715_s23 + $0x30] sm:$0xff]  ;;  %v2327_v32 = vld [vmem:[%s2715_s23 + $0x38] sm:$0xff]  ;;  %p2525_p11 = scmp.ne.s32.totalorder %s2523_s25, %s2524_s26 }
  0x23   : > { %1108 = vrot.lane.b32.xlu0 %v2720_v8, %s2575_s22  ;;  %716 = vmatpush.bf16.msrb.mxu1 %v2330_v17  ;;  %v2321_v27 = vld [vmem:[%s2715_s23 + $0x2c] sm:$0xff]  ;;  %v2322_v31 = vld [vmem:[%s2715_s23 + $0x34] sm:$0xff]  ;;  %v2323_v35 = vld [vmem:[%s2715_s23 + $0x3c] sm:$0xff] }
  0x24   : > { %803 = vmatpush.bf16.msra.mxu2 %v2335_v15  ;;  %975 = vmatpush.bf16.msra.mxu0 %v2345_v18  ;;  %v2312_v30 = vld [vmem:[%s2715_s23 + $0x10] sm:$0xff]  ;;  %v2318_v33 = vld [vmem:[%s2715_s23 + $0x38] sm:$0xff]  ;;  %v2328_v36 = vld [vmem:[%s2715_s23 + $0x40] sm:$0xff]  ;;  %p2526_p12 = pnand %p2525_p11, %p2664_p5 }
  0x25   : > { %1116 = vrot.lane.b32.xlu2 %v2740_v14, %s2575_s22  ;;  %v2313_v34 = vld [vmem:[%s2715_s23 + $0x18] sm:$0xff]  ;;  %v2319_v37 = vld [vmem:[%s2715_s23 + $0x40] sm:$0xff]  ;;  %v2329_v40 = vld [vmem:[%s2715_s23 + $0x48] sm:$0xff] }
  0x26   : > { %v2314_v38 = vld [vmem:[%s2715_s23 + $0x20] sm:$0xff]  ;;  %v2336_v41 = vld [vmem:[%s2715_s23 + $0x54] sm:$0xff]  ;;  %v2343_v61 = vld [vmem:[%s2715_s23 + $0x68] sm:$0xff]  ;;  %p2527_p13 = pneg %p2526_p12 }
  0x27   : > { %v2324_v39 = vld [vmem:[%s2715_s23 + $0x44] sm:$0xff]  ;;  %v2331_v42 = vld [vmem:[%s2715_s23 + $0x50] sm:$0xff]  ;;  %v2341_v43 = vld [vmem:[%s2715_s23 + $0x58] sm:$0xff] }
  0x28   : > { %v2337_v49 = vld [vmem:[%s2715_s23 + $0x5c] sm:$0xff]  ;;  %v2338_v59 = vld [vmem:[%s2715_s23 + $0x64] sm:$0xff]  ;;  %v2339_v15 = vld [vmem:[%s2715_s23 + $0x6c] sm:$0xff] }
  0x29   : > { %v2332_v50 = vld [vmem:[%s2715_s23 + $0x58] sm:$0xff]  ;;  %v2342_v51 = vld [vmem:[%s2715_s23 + $0x60] sm:$0xff]  ;;  %v2334_v17 = vld [vmem:[%s2715_s23 + $0x68] sm:$0xff] }
  0x2a   : > { %1120 = vrot.lane.b32.xlu1 %v2766_v20, %s2575_s22  ;;  %v2333_v60 = vld [vmem:[%s2715_s23 + $0x60] sm:$0xff]  ;;  %v2344_v18 = vld [vmem:[%s2715_s23 + $0x70] sm:$0xff]  ;;  %s2578_s23 = smov 122  }
  0x2b   : > { %1118 = vrot.lane.b32.xlu0 %v2761_v19, %s2575_s22 }
  0x2f   : > { %2065 = vmatmul.msk.bf16.gmra.mxu3 %vm306_vm0, %v2366_v21  ;;  %2055 = vmatmul.msk.bf16.gmra.mxu0 %vm306_vm0, %v2393_v23 }
  0x31   : > { %2057 = vmatmul.msk.bf16.gmra.mxu2 %vm306_vm0, %v2396_v22  ;;  %2063 = vmatmul.msk.bf16.gmra.mxu1 %vm306_vm0, %v2364_v24 }
  0x3f   : > { %2122 = vmatmul.msk.bf16.vlgmr.msrb.gmra.mxu3 %vm306_vm0, %v2316_v25  ;;  %2156 = vmatmul.msk.bf16.vlgmr.msrb.gmra.mxu0 %vm306_vm0, %v2321_v27  ;;  %v2346_v27 = vld [vmem:[%s3608_s4] sm:$0xff] }
  0x40   : > { %1060 = vmatpush.bf16.msra.mxu1 %v2346_v27 }
  0x41   : > { %2088 = vmatmul.msk.bf16.vlgmr.msrb.gmra.mxu2 %vm306_vm0, %v2311_v26  ;;  %2190 = vmatmul.msk.bf16.vlgmr.msrb.gmra.mxu1 %vm306_vm0, %v2326_v28 }
  0x4f   : > { %2123 = vmatmul.msk.bf16.gmra.mxu3 %vm306_vm0, %v2317_v29  ;;  %2157 = vmatmul.msk.bf16.gmra.mxu0 %vm306_vm0, %v2322_v31 }
  0x51   : > { %2089 = vmatmul.msk.bf16.gmra.mxu2 %vm306_vm0, %v2312_v30  ;;  %2191 = vmatmul.msk.bf16.gmra.mxu1 %vm306_vm0, %v2327_v32 }
  0x5f   : > { %2124 = vmatmul.msk.bf16.gmra.mxu3 %vm306_vm0, %v2318_v33  ;;  %2158 = vmatmul.msk.bf16.gmra.mxu0 %vm306_vm0, %v2323_v35 }
  0x61   : > { %2090 = vmatmul.msk.bf16.gmra.mxu2 %vm306_vm0, %v2313_v34  ;;  %2192 = vmatmul.msk.bf16.gmra.mxu1 %vm306_vm0, %v2328_v36 }
  0x6f   : > { %2125 = vmatmul.msk.bf16.gmra.mxu3 %vm306_vm0, %v2319_v37  ;;  %2159 = vmatmul.msk.bf16.gmra.mxu0 %vm306_vm0, %v2324_v39 }
  0x71   : > { %2091 = vmatmul.msk.bf16.gmra.mxu2 %vm306_vm0, %v2314_v38  ;;  %2193 = vmatmul.msk.bf16.gmra.mxu1 %vm306_vm0, %v2329_v40 }
  0x77   : > { %v1115_v44 = vpop.permute.xlu2 %1114 }
  0x78   : > { %v1134_v58 = vsub.f32 %v2708_v7, %v1115_v44 }
  0x7a   : > { %v1142_v29 = vmul.f32 0.5, %v1134_v58 }
  0x7f   : > { %2258 = vmatmul.msk.bf16.vlgmr.msra.gmra.mxu3 %vm306_vm0, %v2336_v41  ;;  %2292 = vmatmul.msk.bf16.vlgmr.msra.gmra.mxu0 %vm306_vm0, %v2341_v43  ;;  %v1117_v52 = vpop.permute.xlu2 %1116 }
  0x80   : > { %v2835_v53 = vsub.f32 %v2740_v14, %v1117_v52 }
  0x81   : > { %2224 = vmatmul.msk.bf16.vlgmr.msra.gmra.mxu2 %vm306_vm0, %v2331_v42 }
  0x8c   : > { %v1111_v45 = vpop.permute.xlu1 %1110 }
  0x8d   : > { %v1107_v46 = vpop.permute.xlu0 %1106  ;;  %v2819_v47 = vsub.f32 %v2680_v1, %v1111_v45 }
  0x8e   : > { %v2822_v48 = vsub.f32 %v2685_v2, %v1107_v46 }
  0x8f   : > { %1198 = vrot.lane.b32.xlu0 %v2819_v47, %s2576_s11  ;;  %2259 = vmatmul.msk.bf16.gmra.mxu3 %vm306_vm0, %v2337_v49  ;;  %v1140_v28 = vmul.f32 0.5, %v2819_v47 }
  0x90   : > { %1194 = vrot.lane.b32.xlu1 %v2822_v48, %s2576_s11  ;;  %2293 = vmatmul.msk.bf16.gmra.mxu0 %vm306_vm0, %v2342_v51  ;;  %v1138_v37 = vmul.f32 0.5, %v2822_v48 }
  0x91   : > { %2225 = vmatmul.msk.bf16.gmra.mxu2 %vm306_vm0, %v2332_v50 }
  0x94   : > { %v1113_v56 = vpop.permute.xlu1 %1112 }
  0x95   : > { %v1109_v54 = vpop.permute.xlu0 %1108  ;;  %v2841_v57 = vsub.f32 %v2730_v13, %v1113_v56 }
  0x96   : > { %v1131_v55 = vsub.f32 %v2720_v8, %v1109_v54 }
  0x97   : > { %1204 = vrot.lane.b32.xlu0 %v2835_v53, %s2576_s11  ;;  %v1141_v46 = vmul.f32 0.5, %v2841_v57 }
  0x98   : > { %1196 = vrot.lane.b32.xlu2 %v1131_v55, %s2576_s11  ;;  %1200 = vrot.lane.b32.xlu1 %v2841_v57, %s2576_s11  ;;  %v1139_v22 = vmul.f32 0.5, %v1131_v55 }
  0x9c   : > { %v328_v63 = vpop.f32.mrf.mxu0  ;;  %v1121_v3 = vpop.permute.xlu1 %1120 }
  0x9d   : > { %v1119_v62 = vpop.permute.xlu0 %1118  ;;  %v1137_v5 = vsub.f32 %v2766_v20, %v1121_v3 }
  0x9e   : > { %v2852_v0 = vsub.f32 %v2761_v19, %v1119_v62  ;;  %v381_v33 = vpop.f32.mrf.mxu1 }
  0x9f   : > { %1284 = vrot.lane.b32.xlu0 %v1131_v55, %s2577_s12  ;;  %2260 = vmatmul.msk.bf16.gmra.mxu3 %vm306_vm0, %v2338_v59  ;;  %v382_v35 = vadd.f32 %v381_v33, %v328_v63  ;;  %v1145_v44 = vmul.f32 0.5, %v1137_v5 }
  0xa0   : > { %1202 = vrot.lane.b32.xlu2 %v1134_v58, %s2576_s11  ;;  %1206 = vrot.lane.b32.xlu1 %v2852_v0, %s2576_s11 }
  0xa1   : > { %2226 = vmatmul.msk.bf16.gmra.mxu2 %vm306_vm0, %v2333_v60  ;;  %2294 = vmatmul.msk.bf16.gmra.mxu0 %vm306_vm0, %v2343_v61 }
  0xa2   : > { %v391_v4 = vpop.f32.mrf.mxu3 }
  0xa4   : > { %v338_v6 = vpop.f32.mrf.mxu2  ;;  %v2863_v10 = vpop.f32.mrf.mxu0 }
  0xa5   : > { %v2861_v9 = vadd.f32 %v391_v4, %v338_v6 }
  0xa6   : > { %v383_v42 = vpop.f32.mrf.mxu1 }
  0xa7   : > { %1290 = vrot.lane.b32.xlu0 %v1134_v58, %s2577_s12  ;;  %v384_v33 = vadd.f32 %v383_v42, %v2863_v10 }
  0xa8   : > { %1208 = vrot.lane.b32.xlu2 %v1137_v5, %s2576_s11  ;;  %1286 = vrot.lane.b32.xlu1 %v2819_v47, %s2577_s12 }
  0xaa   : > { %v393_v11 = vpop.f32.mrf.mxu3 }
  0xac   : > { %v340_v12 = vpop.f32.mrf.mxu2  ;;  %v333_v21 = vpop.f32.mrf.mxu0 }
  0xad   : > { %v2870_v16 = vadd.f32 %v393_v11, %v340_v12 }
  0xae   : > { %v386_v50 = vpop.f32.mrf.mxu1 }
  0xaf   : > { %1296 = vrot.lane.b32.xlu0 %v1137_v5, %s2577_s12  ;;  %2261 = vmatmul.msk.bf16.gmra.mxu3 %vm306_vm0, %v2339_v15  ;;  %v387_v51 = vadd.f32 %v386_v50, %v333_v21 }
  0xb0   : > { %1282 = vrot.lane.b32.xlu2 %v2822_v48, %s2577_s12  ;;  %1292 = vrot.lane.b32.xlu1 %v2835_v53, %s2577_s12  ;;  %v1143_v48 = vmul.f32 0.5, %v2835_v53 }
  0xb1   : > { %2227 = vmatmul.msk.bf16.gmra.mxu2 %vm306_vm0, %v2334_v17  ;;  %2295 = vmatmul.msk.bf16.gmra.mxu0 %vm306_vm0, %v2344_v18 }
  0xb2   : > { %v396_v23 = vpop.f32.mrf.mxu3 }
  0xb4   : > { %v343_v24 = vpop.f32.mrf.mxu2  ;;  %v2884_v26 = vpop.f32.mrf.mxu0 }
  0xb5   : > { %v2882_v25 = vadd.f32 %v396_v23, %v343_v24 }
  0xb6   : > { %v388_v11 = vpop.f32.mrf.mxu1 }
  0xb7   : > { %1156 = vrot.lane.b32.xlu0 %v1139_v22, %s2578_s23 }
  0xb8   : > { %1288 = vrot.lane.b32.xlu2 %v2841_v57, %s2577_s12  ;;  %1158 = vrot.lane.b32.xlu1 %v1140_v28, %s2578_s23  ;;  %v1144_v57 = vmul.f32 0.5, %v2852_v0 }
  0xba   : > { %v398_v30 = vpop.f32.mrf.mxu3 }
  0xbc   : > { %v345_v31 = vpop.f32.mrf.mxu2  ;;  %v632_v34 = vpop.f32.mrf.mxu0 }
  0xbd   : > { %v2894_v32 = vadd.f32 %v398_v30, %v345_v31 }
  0xbe   : > { %v718_v18 = vpop.f32.mrf.mxu1 }
  0xbf   : > { %1162 = vrot.lane.b32.xlu0 %v1142_v29, %s2578_s23 }
  0xc0   : > { %1294 = vrot.lane.b32.xlu2 %v2852_v0, %s2577_s12  ;;  %1164 = vrot.lane.b32.xlu1 %v1143_v48, %s2578_s23 }
  0xc2   : > { %v546_v36 = vpop.f32.mrf.mxu3 }
  0xc4   : > { %v459_v38 = vpop.f32.mrf.mxu2  ;;  %v634_v40 = vpop.f32.mrf.mxu0 }
  0xc5   : > { %v479_v39 = vadd.f32 %v459_v38, %v382_v35 }
  0xc6   : > { %v720_v30 = vpop.f32.mrf.mxu1 }
  0xc7   : > { %v566_v41 = vadd.f32 %v546_v36, %v479_v39  ;;  %1168 = vrot.lane.b32.xlu0 %v1145_v44, %s2578_s23 }
  0xc8   : > { %1154 = vrot.lane.b32.xlu2 %v1138_v37, %s2578_s23 }
  0xc9   : > { %v652_v43 = vadd.f32 %v632_v34, %v566_v41 }
  0xca   : > { %v548_v45 = vpop.f32.mrf.mxu3 }
  0xcc   : > { %v461_v47 = vpop.f32.mrf.mxu2  ;;  %v637_v49 = vpop.f32.mrf.mxu0 }
  0xcd   : > { %v480_v35 = vadd.f32 %v461_v47, %v384_v33 }
  0xcf   : > { %v567_v38 = vadd.f32 %v548_v45, %v480_v35  ;;  %v2947_v45 = vld [vmem:[%s3607_s3] ss:$0 sm:$0xff] }
  0xd0   : > { %1160 = vrot.lane.b32.xlu2 %v1141_v46, %s2578_s23 }
  0xd1   : > { %v653_v50 = vadd.f32 %v634_v40, %v567_v38 }
  0xd2   : > { %v551_v52 = vpop.f32.mrf.mxu3 }
  0xd3   : > { %v739_v42 = vadd.f32 %v720_v30, %v653_v50 }
  0xd4   : > { %v464_v54 = vpop.f32.mrf.mxu2  ;;  %v2906_v56 = vpop.f32.mrf.mxu0 }
  0xd5   : > { %v481_v55 = vadd.f32 %v464_v54, %v387_v51 }
  0xd7   : > { %v568_v58 = vadd.f32 %v551_v52, %v481_v55  ;;  %v389_v55 = vadd.f32 %v388_v11, %v2884_v26 }
  0xd8   : > { %1166 = vrot.lane.b32.xlu2 %v1144_v57, %s2578_s23 }
  0xd9   : > { %v654_v59 = vadd.f32 %v637_v49, %v568_v58  ;;  %v723_v49 = vpop.f32.mrf.mxu1 }
  0xda   : > { %v553_v60 = vpop.f32.mrf.mxu3 }
  0xdb   : > { %v740_v26 = vadd.f32 %v723_v49, %v654_v59 }
  0xdc   : > { %v466_v61 = vpop.f32.mrf.mxu2  ;;  %v642_v62 = vpop.f32.mrf.mxu0 }
  0xe2   : > { %v556_v63 = vpop.f32.mrf.mxu3 }
  0xe4   : > { %v469_v53 = vpop.f32.mrf.mxu2  ;;  %v2911_v4 = vpop.f32.mrf.mxu0 }
  0xe5   : > { %v483_v3 = vadd.f32 %v469_v53, %v2861_v9  ;;  %v725_v53 = vpop.f32.mrf.mxu1 }
  0xe7   : > { %v570_v5 = vadd.f32 %v556_v63, %v483_v3 }
  0xe9   : > { %v2913_v6 = vadd.f32 %v642_v62, %v570_v5  ;;  %v482_v62 = vadd.f32 %v466_v61, %v389_v55 }
  0xea   : > { %v2915_v12 = vpop.f32.mrf.mxu3 }
  0xeb   : > { %v569_v11 = vadd.f32 %v553_v60, %v482_v62 }
  0xec   : > { %v2917_v15 = vpop.f32.mrf.mxu2  ;;  %v647_v0 = vpop.f32.mrf.mxu0 }
  0xed   : > { %v655_v35 = vadd.f32 %v2906_v56, %v569_v11  ;;  %v728_v60 = vpop.f32.mrf.mxu1 }
  0xf2   : > { %v2919_v17 = vpop.permute.xlu2 %1196  ;;  %v561_v21 = vpop.f32.mrf.mxu3 }
  0xf4   : > { %v474_v22 = vpop.f32.mrf.mxu2  ;;  %v2922_v24 = vpop.f32.mrf.mxu0 }
  0xf5   : > { %v485_v23 = vadd.f32 %v474_v22, %v2882_v25  ;;  %v738_v25 = vadd.f32 %v718_v18, %v652_v43 }
  0xf7   : > { %v572_v9 = vadd.f32 %v561_v21, %v485_v23 }
  0xf9   : > { %v2924_v27 = vadd.f32 %v647_v0, %v572_v9 }
  0xfa   : > { %v2926_v28 = vpop.permute.xlu2 %1202  ;;  %v2928_v29 = vpop.f32.mrf.mxu3 }
  0xfc   : > { %v2930_v31 = vpop.f32.mrf.mxu2  ;;  %v977_v34 = vpop.f32.mrf.mxu0 }
 0x101   : > { %v2933_v36 = vpop.permute.xlu0 %1198 }
 0x102   : > { %v2935_v37 = vpop.permute.xlu2 %1208  ;;  %v891_v39 = vpop.f32.mrf.mxu3 }
 0x103   : > { %v2937_v46 = vpop.permute.xlu1 %1194 }
 0x104   : > { %v805_v41 = vpop.f32.mrf.mxu2  ;;  %v979_v48 = vpop.f32.mrf.mxu0 }
 0x105   : > { %v825_v44 = vadd.f32 %v805_v41, %v738_v25  ;;  %v741_v41 = vadd.f32 %v725_v53, %v655_v35 }
 0x107   : > { %v911_v52 = vadd.f32 %v891_v39, %v825_v44 }
 0x109   : > { %v2939_v51 = vpop.permute.xlu0 %1204  ;;  %v997_v43 = vadd.f32 %v977_v34, %v911_v52 }
 0x10a   : > { %v2941_v10 = vpop.permute.xlu2 %1282  ;;  %v893_v47 = vpop.f32.mrf.mxu3 }
 0x10b   : > { %v2949_v57 = vpop.permute.xlu1 %1200  ;;  %v1009_v5 = vadd.f32 %v2947_v45, %v997_v43 }
 0x10c   : > { %v807_v54 = vpop.f32.mrf.mxu2 }
 0x10d   : > { %v826_v58 = vadd.f32 %v807_v54, %v739_v42  ;;  %v982_v40 = vpop.f32.mrf.mxu0  ;;  %v1017_v9 = vmax.f32 %v1009_v5, 0.0  ;;  %v484_v42 = vadd.f32 %v2917_v15, %v2870_v16 }
 0x10f   : > { %v912_v63 = vadd.f32 %v893_v47, %v826_v58 }
 0x111   : > { %v2951_v3 = vpop.permute.xlu0 %1284  ;;  %v998_v0 = vadd.f32 %v979_v48, %v912_v63  ;;  %v742_v63 = vadd.f32 %v728_v60, %v2913_v6 }
 0x112   : > { %v2954_v18 = vpop.permute.xlu2 %1288  ;;  %v896_v22 = vpop.f32.mrf.mxu3 }
 0x113   : > { %v1010_v21 = vadd.f32 %v2947_v45, %v998_v0  ;;  %v2957_v34 = vpop.permute.xlu1 %1206  ;;  %v730_v0 = vpop.f32.mrf.mxu1 }
 0x114   : > { %v810_v23 = vpop.f32.mrf.mxu2 }
 0x115   : > { %v1018_v30 = vmax.f32 %v1010_v21, 0.0  ;;  %v827_v33 = vadd.f32 %v810_v23, %v740_v26  ;;  %v984_v61 = vpop.f32.mrf.mxu0 }
 0x117   : > { %v1025_v25 = vpack.c.bf16 %v1018_v30, %v1017_v9  ;;  %v913_v39 = vadd.f32 %v896_v22, %v827_v33 }
 0x119   : > { %v2960_v38 = vpop.permute.xlu0 %1290  ;;  %2300 = vmatmul.msk.bf16.vlgmr.msra.gmra.mxu1 %vm306_vm0, %v1025_v25  ;;  %v999_v48 = vadd.f32 %v982_v40, %v913_v39  ;;  %v571_v40 = vadd.f32 %v2915_v12, %v484_v42 }
 0x11a   : > { %v2963_v59 = vpop.permute.xlu2 %1294  ;;  %v898_v44 = vpop.f32.mrf.mxu3 }
 0x11b   : > { %v2965_v52 = vpop.permute.xlu1 %1286  ;;  %v1011_v55 = vadd.f32 %v2947_v45, %v999_v48  ;;  %v657_v22 = vadd.f32 %v2911_v4, %v571_v40 }
 0x11c   : > { %v812_v49 = vpop.f32.mrf.mxu2 }
 0x11d   : > { %v828_v50 = vadd.f32 %v812_v49, %v741_v41  ;;  %v1019_v16 = vmax.f32 %v1011_v55, 0.0  ;;  %v733_v41 = vpop.f32.mrf.mxu1 }
 0x11e   : > { %v987_v54 = vpop.f32.mrf.mxu0 }
 0x11f   : > { %v914_v56 = vadd.f32 %v898_v44, %v828_v50 }
 0x121   : > { %v2969_v47 = vpop.permute.xlu0 %1296  ;;  %v1000_v43 = vadd.f32 %v984_v61, %v914_v56  ;;  %v743_v61 = vadd.f32 %v730_v0, %v657_v22  ;;  %v744_v56 = vadd.f32 %v733_v41, %v2924_v27 }
 0x122   : > { %v1155_v58 = vpop.permute.xlu2 %1154  ;;  %v901_v5 = vpop.f32.mrf.mxu3 }
 0x123   : > { %v1178_v62 = vadd.f32 %v1155_v58, %v2685_v2  ;;  %v1012_v53 = vadd.f32 %v2947_v45, %v1000_v43  ;;  %v2977_v21 = vpop.permute.xlu1 %1292 }
 0x124   : > { %v815_v26 = vpop.f32.mrf.mxu2 }
 0x125   : > { %1234 = vrot.lane.b32.xlu0 %v1178_v62, %s2577_s12  ;;  %v1020_v15 = vmax.f32 %v1012_v53, 0.0  ;;  %v829_v11 = vadd.f32 %v815_v26, %v742_v63 }
 0x126   : > { %v989_v30 = vpop.f32.mrf.mxu0 }
 0x127   : > { %v1026_v23 = vpack.c.bf16 %v1020_v15, %v1019_v16  ;;  %v915_v9 = vadd.f32 %v901_v5, %v829_v11  ;;  %v735_v5 = vpop.f32.mrf.mxu1 }
 0x129   : > { %v1157_v2 = vpop.permute.xlu0 %1156  ;;  %2301 = vmatmul.msk.bf16.gmra.mxu1 %vm306_vm0, %v1026_v23  ;;  %v1001_v39 = vadd.f32 %v987_v54, %v915_v9 }
 0x12a   : > { %v1179_v6 = vadd.f32 %v1157_v2, %v2720_v8  ;;  %v1161_v12 = vpop.permute.xlu2 %1160  ;;  %v903_v35 = vpop.f32.mrf.mxu3  ;;  %v486_v8 = vadd.f32 %v2930_v31, %v2894_v32 }
 0x12b   : > { %v1181_v33 = vadd.f32 %v1161_v12, %v2730_v13  ;;  %v1159_v60 = vpop.permute.xlu1 %1158  ;;  %v1013_v13 = vadd.f32 %v2947_v45, %v1001_v39 }
 0x12c   : > { %1236 = vrot.lane.b32.xlu1 %v1179_v6, %s2577_s12  ;;  %v817_v25 = vpop.f32.mrf.mxu2  ;;  %v1180_v44 = vadd.f32 %v1159_v60, %v2680_v1  ;;  %v573_v54 = vadd.f32 %v2928_v29, %v486_v8 }
 0x12d   : > { %1240 = vrot.lane.b32.xlu0 %v1181_v33, %s2577_s12  ;;  %v830_v4 = vadd.f32 %v817_v25, %v743_v61  ;;  %v1021_v31 = vmax.f32 %v1013_v13, 0.0 }
 0x12e   : > { %1238 = vrot.lane.b32.xlu2 %v1180_v44, %s2577_s12  ;;  %v992_v32 = vpop.f32.mrf.mxu0  ;;  %v659_v53 = vadd.f32 %v2922_v24, %v573_v54 }
 0x12f   : > { %v916_v49 = vadd.f32 %v903_v35, %v830_v4 }
 0x130   : > { %v745_v29 = vadd.f32 %v735_v5, %v659_v53 }
 0x131   : > { %v1163_v48 = vpop.permute.xlu0 %1162  ;;  %v1002_v50 = vadd.f32 %v989_v30, %v916_v49 }
 0x132   : > { %v1182_v42 = vadd.f32 %v1163_v48, %v2708_v7  ;;  %v906_v43 = vpop.f32.mrf.mxu3  ;;  %v1167_v63 = vpop.permute.xlu2 %1166 }
 0x133   : > { %v1014_v55 = vadd.f32 %v2947_v45, %v1002_v50  ;;  %v1184_v40 = vadd.f32 %v1167_v63, %v2761_v19  ;;  %v1165_v30 = vpop.permute.xlu1 %1164 }
 0x134   : > { %1242 = vrot.lane.b32.xlu1 %v1182_v42, %s2577_s12  ;;  %v820_v1 = vpop.f32.mrf.mxu2  ;;  %v1183_v33 = vadd.f32 %v1165_v30, %v2740_v14 }
 0x135   : > { %v1022_v58 = vmax.f32 %v1014_v55, 0.0  ;;  %v831_v62 = vadd.f32 %v820_v1, %v744_v56  ;;  %1246 = vrot.lane.b32.xlu0 %v1184_v40, %s2577_s12 }
 0x136   : > { %v994_v22 = vpop.f32.mrf.mxu0  ;;  %1244 = vrot.lane.b32.xlu2 %v1183_v33, %s2577_s12 }
 0x137   : > { %v1027_v7 = vpack.c.bf16 %v1022_v58, %v1021_v31  ;;  %v917_v27 = vadd.f32 %v906_v43, %v831_v62 }
 0x139   : > { %2302 = vmatmul.msk.bf16.gmra.mxu1 %vm306_vm0, %v1027_v7  ;;  %v1003_v16 = vadd.f32 %v992_v32, %v917_v27  ;;  %v1169_v11 = vpop.permute.xlu0 %1168 }
 0x13a   : > { %v908_v26 = vpop.f32.mrf.mxu3  ;;  %v1185_v23 = vadd.f32 %v1169_v11, %v2766_v20  ;;  %v3009_v20 = vld [vmem:[%s3609_s5] ss:$0 sm:$0xff] }
 0x13b   : > { %v1015_v19 = vadd.f32 %v2947_v45, %v1003_v16 }
 0x13c   : > { %v822_v0 = vpop.f32.mrf.mxu2  ;;  %1248 = vrot.lane.b32.xlu1 %v1185_v23, %s2577_s12 }
 0x13d   : > { %v832_v15 = vadd.f32 %v822_v0, %v745_v29  ;;  %v1023_v6 = vmax.f32 %v1015_v19, 0.0 }
 0x13f   : > { %v918_v2 = vadd.f32 %v908_v26, %v832_v15 }
 0x141   : > { %v1004_v24 = vadd.f32 %v994_v22, %v918_v2 }
 0x143   : > { %v1016_v9 = vadd.f32 %v2947_v45, %v1004_v24 }
 0x145   : > { %v1024_v12 = vmax.f32 %v1016_v9, 0.0 }
 0x147   : > { %v1028_v61 = vpack.c.bf16 %v1024_v12, %v1023_v6 }
 0x149   : > { %2303 = vmatmul.msk.bf16.gmra.mxu1 %vm306_vm0, %v1028_v61 }
 0x196   : > { %v1062_v35 = vpop.f32.mrf.mxu1 }
 0x197   : > { %v3012_v25 = vadd.f32 %v3009_v20, %v1062_v35 }
 0x199   : > { %v1082_v45 = vmin.f32 %v3012_v25, 4.1351666  ;;  %v1420_v39 = vsub.f32 0.0, %v3012_v25 }
 0x19b   : > { %v1266_v4 = vmul.f32 1.442695, %v1082_v45  ;;  %v1428_v14 = vmul.f32 1.442695, %v1420_v39 }
 0x19d   : > { %2448 = vpow2.f32 %v1266_v4 }
 0x19e   : > { %2450 = vpow2.f32 %v1428_v14  ;;  %v1064_v60 = vpop.f32.mrf.mxu1 }
 0x19f   : > { %v3017_v41 = vadd.f32 %v3009_v20, %v1064_v60 }
 0x1a1   : > { %v1083_v44 = vmin.f32 %v3017_v41, 4.1351666  ;;  %v1421_v8 = vsub.f32 0.0, %v3017_v41 }
 0x1a3   : > { %v2449_v49 = vpop.eup %2448  ;;  %v1268_v48 = vmul.f32 1.442695, %v1083_v44  ;;  %v1430_v13 = vmul.f32 1.442695, %v1421_v8  ;;  %v2579_v8 = vmov 0  }
 0x1a4   : > { %v2451_v50 = vpop.eup %2450  ;;  %v1306_v42 = vmul.f32 %v2449_v49, %v2941_v10 }
 0x1a5   : > { %v1444_v56 = vadd.f32 1.0, %v2451_v50  ;;  %2452 = vpow2.f32 %v1268_v48 }
 0x1a6   : > { %2454 = vpow2.f32 %v1430_v13  ;;  %v1067_v54 = vpop.f32.mrf.mxu1  ;;  %v1314_v55 = vmul.f32 0.5, %v1306_v42 }
 0x1a7   : > { %2456 = vrcp.f32 %v1444_v56  ;;  %v3023_v43 = vadd.f32 %v3009_v20, %v1067_v54  ;;  %v1461_v15 = vand.u32 2147483647, %v1444_v56  ;;  %vm1457_vm2 = vweird.f32 %v1444_v56 }
 0x1a8   : > { %1330 = vrot.lane.b32.xlu1 %v1314_v55, %s2578_s23 }
 0x1a9   : > { %v1084_v1 = vmin.f32 %v3023_v43, 4.1351666  ;;  %v1422_v32 = vsub.f32 0.0, %v3023_v43  ;;  %vm1462_vm4 = vcmp.eq.f32.partialorder %v1461_v15, 8.507059e+37 }
 0x1ab   : > { %v2453_v31 = vpop.eup %2452  ;;  %v1270_v58 = vmul.f32 1.442695, %v1084_v1  ;;  %v1432_v62 = vmul.f32 1.442695, %v1422_v32 }
 0x1ac   : > { %v2455_v63 = vpop.eup %2454  ;;  %v1307_v10 = vmul.f32 %v2453_v31, %v2951_v3  ;;  %v1463_v3 = vand.u32 2147483648, %v1444_v56 }
 0x1ad   : > { %v2457_v40 = vpop.eup %2456  ;;  %v1445_v53 = vadd.f32 1.0, %v2455_v63  ;;  %2458 = vpow2.f32 %v1270_v58 }
 0x1ae   : > { %2460 = vpow2.f32 %v1432_v62  ;;  %v1069_v7 = vpop.f32.mrf.mxu1  ;;  %v1315_v5 = vmul.f32 0.5, %v1307_v10  ;;  %v1453_v27 = vmul.f32 %v2457_v40, %v1444_v56  ;;  %vm1458_vm1 = vweird.f32 %v2457_v40 }
 0x1af   : > { %2462 = vrcp.f32 %v1445_v53  ;;  %v3030_v29 = vadd.f32 %v3009_v20, %v1069_v7  ;;  %vm1459_vm3 = vmor %vm1457_vm2, %vm1458_vm1  ;;  %v1464_v30 = vor.u32 1.1754944e-38, %v1463_v3  ;;  %v1476_v14 = vand.u32 2147483647, %v1445_v53 }
 0x1b0   : > { %1332 = vrot.lane.b32.xlu2 %v1315_v5, %s2578_s23  ;;  %v1454_v0 = vsub.f32 1.0, %v1453_v27  ;;  %v1478_v48 = vand.u32 2147483648, %v1445_v53  ;;  %vm1472_vm7 = vweird.f32 %v1445_v53 }
 0x1b1   : > { %v1085_v26 = vmin.f32 %v3030_v29, 4.1351666  ;;  %v1423_v16 = vsub.f32 0.0, %v3030_v29  ;;  %vm1477_vm9 = vcmp.eq.f32.partialorder %v1476_v14, 8.507059e+37 }
 0x1b2   : > { %v1455_v11 = vmul.f32 %v2457_v40, %v1454_v0  ;;  %v1479_v58 = vor.u32 1.1754944e-38, %v1478_v48 }
 0x1b3   : > { %v2459_v22 = vpop.eup %2458  ;;  %v1272_v23 = vmul.f32 1.442695, %v1085_v26  ;;  %v1434_v2 = vmul.f32 1.442695, %v1423_v16 }
 0x1b4   : > { %v2461_v19 = vpop.eup %2460  ;;  %v1456_v24 = vadd.f32 %v2457_v40, %v1455_v11  ;;  %v1308_v9 = vmul.f32 %v2459_v22, %v2965_v52 }
 0x1b5   : > { %v2463_v6 = vpop.eup %2462  ;;  %v3036_v12 = vadd.f32 1.0, %v2461_v19  ;;  %2464 = vpow2.f32 %v1272_v23 }
 0x1b6   : > { %2466 = vpow2.f32 %v1434_v2  ;;  %v1072_v33 = vpop.f32.mrf.mxu1  ;;  %v1460_v61 = vsel %vm1459_vm3, %v2457_v40, %v1456_v24  ;;  %v1316_v35 = vmul.f32 0.5, %v1308_v9  ;;  %v1468_v45 = vmul.f32 %v2463_v6, %v1445_v53 }
 0x1b7   : > { %2468 = vrcp.f32 %v3036_v12  ;;  %v3040_v39 = vadd.f32 %v3009_v20, %v1072_v33  ;;  %v1465_v4 = vsel %vm1462_vm4, %v1464_v30, %v1460_v61  ;;  %vm1473_vm6 = vweird.f32 %v2463_v6 }
 0x1b8   : > { %1700 = vrot.lane.b32.xlu1 %v1465_v4, %s2577_s12  ;;  %1334 = vrot.lane.b32.xlu0 %v1316_v35, %s2578_s23  ;;  %vm1644_vm5 = vcmp.ge.f32.partialorder %v1465_v4, 0.0  ;;  %v1469_v52 = vsub.f32 1.0, %v1468_v45  ;;  %vm1474_vm8 = vmor %vm1472_vm7, %vm1473_vm6  ;;  %v1491_v5 = vand.u32 2147483647, %v3036_v12  ;;  %v1493_v16 = vand.u32 2147483648, %v3036_v12 }
 0x1b9   : > { %v1086_v60 = vmin.f32 %v3040_v39, 4.1351666  ;;  %v1424_v44 = vsub.f32 0.0, %v3040_v39  ;;  %v1652_v49 = vsel %vm1644_vm5, 1, %v2579_v8  ;;  %vm1487_vm12 = vweird.f32 %v3036_v12 }
 0x1ba   : > { %1660 = vrot.lane.b32.xlu2 %v1652_v49, %s2577_s12  ;;  %v1470_v13 = vmul.f32 %v2463_v6, %v1469_v52  ;;  %vm1492_vm14 = vcmp.eq.f32.partialorder %v1491_v5, 8.507059e+37 }
 0x1bb   : > { %v2465_v50 = vpop.eup %2464  ;;  %v1274_v42 = vmul.f32 1.442695, %v1086_v60  ;;  %v1436_v56 = vmul.f32 1.442695, %v1424_v44 }
 0x1bc   : > { %v2467_v54 = vpop.eup %2466  ;;  %v1309_v55 = vmul.f32 %v2465_v50, %v2954_v18  ;;  %v1471_v1 = vadd.f32 %v2463_v6, %v1470_v13 }
 0x1bd   : > { %v2469_v32 = vpop.eup %2468  ;;  %v3049_v31 = vadd.f32 1.0, %v2467_v54  ;;  %2470 = vpow2.f32 %v1274_v42 }
 0x1be   : > { %2472 = vpow2.f32 %v1436_v56  ;;  %v1074_v62 = vpop.f32.mrf.mxu1  ;;  %v1317_v63 = vmul.f32 0.5, %v1309_v55  ;;  %v1475_v10 = vsel %vm1474_vm8, %v2463_v6, %v1471_v1  ;;  %v1483_v40 = vmul.f32 %v2469_v32, %v3036_v12 }
 0x1bf   : > { %2474 = vrcp.f32 %v3049_v31  ;;  %v3054_v7 = vadd.f32 %v3009_v20, %v1074_v62  ;;  %v1480_v18 = vsel %vm1477_vm9, %v1479_v58, %v1475_v10  ;;  %vm1488_vm11 = vweird.f32 %v2469_v32 }
 0x1c0   : > { %1336 = vrot.lane.b32.xlu1 %v1317_v63, %s2578_s23  ;;  %vm1645_vm10 = vcmp.ge.f32.partialorder %v1480_v18, 0.0  ;;  %v1484_v53 = vsub.f32 1.0, %v1483_v40  ;;  %vm1489_vm13 = vmor %vm1487_vm12, %vm1488_vm11  ;;  %v1494_v6 = vor.u32 1.1754944e-38, %v1493_v16  ;;  %v1506_v4 = vand.u32 2147483647, %v3049_v31 }
 0x1c1   : > { %v1087_v27 = vmin.f32 %v3054_v7, 4.1351666  ;;  %v1425_v0 = vsub.f32 0.0, %v3054_v7  ;;  %v1653_v26 = vsel %vm1645_vm10, 1, %v2579_v8  ;;  %v1508_v44 = vand.u32 2147483648, %v3049_v31 }
 0x1c2   : > { %1662 = vrot.lane.b32.xlu0 %v1653_v26, %s2577_s12  ;;  %1702 = vrot.lane.b32.xlu2 %v1480_v18, %s2577_s12  ;;  %v1485_v15 = vmul.f32 %v2469_v32, %v1484_v53  ;;  %vm1502_vm1 = vweird.f32 %v3049_v31  ;;  %vm1507_vm3 = vcmp.eq.f32.partialorder %v1506_v4, 8.507059e+37 }
 0x1c3   : > { %v2471_v3 = vpop.eup %2470  ;;  %v1276_v11 = vmul.f32 1.442695, %v1087_v27  ;;  %v1438_v22 = vmul.f32 1.442695, %v1425_v0 }
 0x1c4   : > { %v2473_v23 = vpop.eup %2472  ;;  %v1486_v2 = vadd.f32 %v2469_v32, %v1485_v15  ;;  %v1310_v19 = vmul.f32 %v2471_v3, %v2960_v38 }
 0x1c5   : > { %v2475_v24 = vpop.eup %2474  ;;  %v3066_v9 = vadd.f32 1.0, %v2473_v23  ;;  %2476 = vpow2.f32 %v1276_v11 }
 0x1c6   : > { %2478 = vpow2.f32 %v1438_v22  ;;  %v1077_v30 = vpop.f32.mrf.mxu1  ;;  %v1490_v33 = vsel %vm1489_vm13, %v2469_v32, %v1486_v2  ;;  %v1318_v61 = vmul.f32 0.5, %v1310_v19  ;;  %v1498_v35 = vmul.f32 %v2475_v24, %v3049_v31 }
 0x1c7   : > { %2480 = vrcp.f32 %v3066_v9  ;;  %v3071_v45 = vadd.f32 %v3009_v20, %v1077_v30  ;;  %v1495_v12 = vsel %vm1492_vm14, %v1494_v6, %v1490_v33  ;;  %vm1503_vm0 = vweird.f32 %v2475_v24 }
 0x1c8   : > { %vm1646_vm15 = vcmp.ge.f32.partialorder %v1495_v12, 0.0  ;;  %v1499_v38 = vsub.f32 1.0, %v1498_v35  ;;  %vm1504_vm2 = vmor %vm1502_vm1, %vm1503_vm0  ;;  %v1509_v32 = vor.u32 1.1754944e-38, %v1508_v44  ;;  %v1523_v27 = vand.u32 2147483648, %v3066_v9 }
 0x1c9   : > { %v1088_v52 = vmin.f32 %v3071_v45, 4.1351666  ;;  %v1426_v14 = vsub.f32 0.0, %v3071_v45  ;;  %v1654_v60 = vsel %vm1646_vm15, 1, %v2579_v8  ;;  %vm1517_vm6 = vweird.f32 %v3066_v9 }
 0x1ca   : > { %1704 = vrot.lane.b32.xlu0 %v1495_v12, %s2577_s12  ;;  %1338 = vrot.lane.b32.xlu2 %v1318_v61, %s2578_s23  ;;  %v1500_v49 = vmul.f32 %v2475_v24, %v1499_v38  ;;  %v1524_v19 = vor.u32 1.1754944e-38, %v1523_v27 }
 0x1cb   : > { %v2477_v48 = vpop.eup %2476  ;;  %v1278_v13 = vmul.f32 1.442695, %v1088_v52  ;;  %v1440_v50 = vmul.f32 1.442695, %v1426_v14  ;;  %1664 = vrot.lane.b32.xlu1 %v1654_v60, %s2577_s12 }
 0x1cc   : > { %v2479_v42 = vpop.eup %2478  ;;  %v1311_v56 = vmul.f32 %v2477_v48, %v2977_v21  ;;  %v1501_v54 = vadd.f32 %v2475_v24, %v1500_v49 }
 0x1cd   : > { %v2481_v55 = vpop.eup %2480  ;;  %v3083_v1 = vadd.f32 1.0, %v2479_v42  ;;  %2482 = vpow2.f32 %v1278_v13 }
 0x1ce   : > { %2484 = vpow2.f32 %v1440_v50  ;;  %v1079_v58 = vpop.f32.mrf.mxu1  ;;  %v1319_v62 = vmul.f32 0.5, %v1311_v56  ;;  %v1505_v63 = vsel %vm1504_vm2, %v2475_v24, %v1501_v54  ;;  %v1513_v10 = vmul.f32 %v2481_v55, %v3066_v9 }
 0x1cf   : > { %2486 = vrcp.f32 %v3083_v1  ;;  %v3088_v21 = vadd.f32 %v3009_v20, %v1079_v58  ;;  %v1510_v40 = vsel %vm1507_vm3, %v1509_v32, %v1505_v63  ;;  %vm1518_vm5 = vweird.f32 %v2481_v55 }
 0x1d0   : > { %vm1647_vm4 = vcmp.ge.f32.partialorder %v1510_v40, 0.0  ;;  %v1514_v31 = vsub.f32 1.0, %v1513_v10  ;;  %v1521_v20 = vand.u32 2147483647, %v3066_v9  ;;  %vm1519_vm7 = vmor %vm1517_vm6, %vm1518_vm5  ;;  %v1538_v9 = vand.u32 2147483648, %v3083_v1 }
 0x1d1   : > { %v1089_v18 = vmin.f32 %v3088_v21, 4.1351666  ;;  %v1427_v53 = vsub.f32 0.0, %v3088_v21  ;;  %v1655_v5 = vsel %vm1647_vm4, 1, %v2579_v8  ;;  %v1536_v12 = vand.u32 2147483647, %v3083_v1 }
 0x1d2   : > { %1340 = vrot.lane.b32.xlu0 %v1319_v62, %s2578_s23  ;;  %1666 = vrot.lane.b32.xlu2 %v1655_v5, %s2577_s12  ;;  %v1515_v0 = vmul.f32 %v2481_v55, %v1514_v31  ;;  %vm1522_vm8 = vcmp.eq.f32.partialorder %v1521_v20, 8.507059e+37  ;;  %vm1532_vm11 = vweird.f32 %v3083_v1  ;;  %v1539_v49 = vor.u32 1.1754944e-38, %v1538_v9 }
 0x1d3   : > { %v2483_v26 = vpop.eup %2482  ;;  %v1280_v16 = vmul.f32 1.442695, %v1089_v18  ;;  %v1442_v15 = vmul.f32 1.442695, %v1427_v53  ;;  %1706 = vrot.lane.b32.xlu1 %v1510_v40, %s2577_s12  ;;  %vm1537_vm13 = vcmp.eq.f32.partialorder %v1536_v12, 8.507059e+37 }
 0x1d4   : > { %v2485_v3 = vpop.eup %2484  ;;  %v1516_v11 = vadd.f32 %v2481_v55, %v1515_v0  ;;  %v1312_v22 = vmul.f32 %v2483_v26, %v2963_v59 }
 0x1d5   : > { %v2487_v23 = vpop.eup %2486  ;;  %v1450_v2 = vadd.f32 1.0, %v2485_v3  ;;  %2488 = vpow2.f32 %v1280_v16  ;;  %v1239_v3 = vpop.permute.xlu2 %1238 }
 0x1d6   : > { %2490 = vpow2.f32 %v1442_v15  ;;  %v1520_v24 = vsel %vm1519_vm7, %v2481_v55, %v1516_v11  ;;  %v1528_v6 = vmul.f32 %v2487_v23, %v3083_v1  ;;  %v1320_v33 = vmul.f32 0.5, %v1312_v22  ;;  %v1237_v11 = vpop.permute.xlu1 %1236 }
 0x1d7   : > { %2492 = vrcp.f32 %v1450_v2  ;;  %v1525_v30 = vsel %vm1522_vm8, %v1524_v19, %v1520_v24  ;;  %vm1533_vm10 = vweird.f32 %v2487_v23  ;;  %v1553_v55 = vand.u32 2147483648, %v1450_v2 }
 0x1d8   : > { %vm1648_vm9 = vcmp.ge.f32.partialorder %v1525_v30, 0.0  ;;  %v1529_v61 = vsub.f32 1.0, %v1528_v6  ;;  %vm1534_vm12 = vmor %vm1532_vm11, %vm1533_vm10  ;;  %v1551_v1 = vand.u32 2147483647, %v1450_v2  ;;  %vm1547_vm0 = vweird.f32 %v1450_v2 }
 0x1d9   : > { %v1656_v35 = vsel %vm1648_vm9, 1, %v2579_v8  ;;  %v1554_v62 = vor.u32 1.1754944e-38, %v1553_v55 }
 0x1da   : > { %1668 = vrot.lane.b32.xlu0 %v1656_v35, %s2577_s12  ;;  %1708 = vrot.lane.b32.xlu2 %v1525_v30, %s2577_s12  ;;  %v1530_v59 = vmul.f32 %v2487_v23, %v1529_v61  ;;  %vm1552_vm2 = vcmp.eq.f32.partialorder %v1551_v1, 8.507059e+37 }
 0x1db   : > { %v2489_v38 = vpop.eup %2488  ;;  %1342 = vrot.lane.b32.xlu1 %v1320_v33, %s2578_s23  ;;  %v3124_v33 = vstv %s265_s27 }
 0x1dc   : > { %v2491_v4 = vpop.eup %2490  ;;  %v1531_v52 = vadd.f32 %v2487_v23, %v1530_v59  ;;  %v1313_v14 = vmul.f32 %v2489_v38, %v2969_v47 }
 0x1dd   : > { %v2493_v60 = vpop.eup %2492  ;;  %v1451_v44 = vadd.f32 1.0, %v2491_v4  ;;  %v3120_v22 = vpop.permute.xlu2 %1244 }
 0x1de   : > { %v1535_v48 = vsel %vm1534_vm12, %v2487_v23, %v1531_v52  ;;  %v1321_v13 = vmul.f32 0.5, %v1313_v14  ;;  %v1543_v50 = vmul.f32 %v2493_v60, %v1450_v2  ;;  %vm1548_vm15 = vweird.f32 %v2493_v60  ;;  %v1243_v19 = vpop.permute.xlu1 %1242 }
 0x1df   : > { %2494 = vrcp.f32 %v1451_v44  ;;  %v1540_v42 = vsel %vm1537_vm13, %v1539_v49, %v1535_v48  ;;  %vm1549_vm1 = vmor %vm1547_vm0, %vm1548_vm15  ;;  %v1568_v53 = vand.u32 2147483648, %v1451_v44  ;;  %v1566_v27 = vand.u32 2147483647, %v1451_v44 }
 0x1e0   : > { %vm1649_vm14 = vcmp.ge.f32.partialorder %v1540_v42, 0.0  ;;  %v1544_v56 = vsub.f32 1.0, %v1543_v50  ;;  %vm1562_vm5 = vweird.f32 %v1451_v44  ;;  %v1219_v23 = vmul.f32 %v2919_v17, %v3017_v41  ;;  %v1235_v17 = vpop.permute.xlu0 %1234 }
 0x1e1   : > { %v1657_v54 = vsel %vm1649_vm14, 1, %v2579_v8  ;;  %v1569_v20 = vor.u32 1.1754944e-38, %v1568_v53  ;;  %vm1567_vm7 = vcmp.eq.f32.partialorder %v1566_v27, 8.507059e+37  ;;  %v1218_v52 = vmul.f32 %v2937_v46, %v3012_v25 }
 0x1e2   : > { %1710 = vrot.lane.b32.xlu0 %v1540_v42, %s2577_s12  ;;  %1344 = vrot.lane.b32.xlu2 %v1321_v13, %s2578_s23  ;;  %v1545_v47 = vmul.f32 %v2493_v60, %v1544_v56  ;;  %v1259_v2 = vadd.f32 %v1237_v11, %v1219_v23  ;;  %s262_s23 = scvt.s32.f32 %s261_s9  ;;  %v1222_v56 = vmul.f32 %v2926_v28, %v3040_v39 }
 0x1e3   : > { %1670 = vrot.lane.b32.xlu1 %v1657_v54, %s2577_s12  ;;  %v1258_v14 = vadd.f32 %v1235_v17, %v1218_v52 }
 0x1e4   : > { %v1546_v32 = vadd.f32 %v2493_v60, %v1545_v47  ;;  %v3144_v54 = vstv %s262_s23  ;;  %s2528_s23 = scalar_lea.hbm %s3611_s7, 128 }
 0x1e5   : > { %v2495_v58 = vpop.eup %2494  ;;  %p2530_p1 = scmp.lt.s32.totalorder %s2528_s23, %s2524_s26 }
 0x1e6   : > { %v1550_v63 = vsel %vm1549_vm1, %v2493_v60, %v1546_v32  ;;  %v1558_v10 = vmul.f32 %v2495_v58, %v1451_v44  ;;  %vm1563_vm4 = vweird.f32 %v2495_v58  ;;  %v3134_v38 = vpop.permute.xlu1 %1248 }
 0x1e7   : > { %v1555_v40 = vsel %vm1552_vm2, %v1554_v62, %v1550_v63  ;;  %vm1564_vm6 = vmor %vm1562_vm5, %vm1563_vm4  ;;  %v1262_v62 = vadd.f32 %v1243_v19, %v1222_v56  ;;  %v1220_v63 = vmul.f32 %v2933_v36, %v3023_v43  ;;  %p2531_p2 = por %p2530_p1, %p2529_p0 }
 0x1e8   : > { %vm1650_vm3 = vcmp.ge.f32.partialorder %v1555_v40, 0.0  ;;  %v1559_v31 = vsub.f32 1.0, %v1558_v10  ;;  %v1241_v60 = vpop.permute.xlu0 %1240 }
 0x1e9   : > { %v1658_v18 = vsel %vm1650_vm3, 1, %v2579_v8  ;;  %p2532_p3 = pnand %p2531_p2, %p2527_p13 }
 0x1ea   : > { %1672 = vrot.lane.b32.xlu2 %v1658_v18, %s2577_s12  ;;  %v1560_v5 = vmul.f32 %v2495_v58, %v1559_v31 }
 0x1eb   : > { %1712 = vrot.lane.b32.xlu1 %v1555_v40, %s2577_s12 }
 0x1ec   : > { %v1561_v0 = vadd.f32 %v2495_v58, %v1560_v5 }
 0x1ee   : > { %v1565_v26 = vsel %vm1564_vm6, %v2495_v58, %v1561_v0 }
 0x1ef   : > { %v1570_v16 = vsel %vm1567_vm7, %v1569_v20, %v1565_v26  ;;  %v1260_v20 = vadd.f32 %v1239_v3, %v1220_v63 }
 0x1f0   : > { %vm1651_vm8 = vcmp.ge.f32.partialorder %v1570_v16, 0.0  ;;  %v3162_v58 = vpop.permute.xlu0 %1246 }
 0x1f1   : > { %v1659_v15 = vsel %vm1651_vm8, 1, %v2579_v8 }
 0x1f2   : > { %1674 = vrot.lane.b32.xlu0 %v1659_v15, %s2577_s12  ;;  %1714 = vrot.lane.b32.xlu2 %v1570_v16, %s2577_s12 }
 0x20a   : > { %v1333_v24 = vpop.permute.xlu2 %1332 }
 0x20b   : > { %v1355_v6 = vsub.f32 %v1259_v2, %v1333_v24  ;;  %v1380_v30 = vadd.f32 %v1333_v24, %v1259_v2  ;;  %v1221_v24 = vmul.f32 %v2949_v57, %v3030_v29 }
 0x20d   : > { %v1363_v61 = vmax.f32 %v1355_v6, 0.0  ;;  %v1388_v35 = vmax.f32 %v1380_v30, 0.0 }
 0x20f   : > { %v3127_v9 = vmin.f32 %v3124_v33, %v1388_v35  ;;  %v3130_v59 = vmin.f32 %v3124_v33, %v1363_v61  ;;  %v3169_v10 = vmin.f32 %v3144_v54, %v1388_v35  ;;  %v1405_v53 = vmin.f32 %v3144_v54, %v1363_v61 }
 0x211   : > { %v1573_v12 = vsub.f32 %v3127_v9, %v3130_v59  ;;  %v1589_v36 = vsub.f32 %v3169_v10, %v1405_v53 }
 0x213   : > { %vm1597_vm10 = vcmp.ge.f32.partialorder %v1589_v36, 1.0 }
 0x214   : > { %v3136_v4 = vpop.permute.xlu2 %1660 }
 0x215   : > { %vm1676_vm8 = vcmp.ne.s32.totalorder %v3136_v4, 0 }
 0x21a   : > { %v1331_v44 = vpop.permute.xlu1 %1330 }
 0x21b   : > { %v1354_v49 = vsub.f32 %v1258_v14, %v1331_v44  ;;  %v1379_v48 = vadd.f32 %v1331_v44, %v1258_v14  ;;  %v1605_v14 = vsel %vm1597_vm10, 1, %v2579_v8  ;;  %v1261_v44 = vadd.f32 %v1241_v60, %v1221_v24 }
 0x21c   : > { %v3140_v13 = vpop.permute.xlu2 %1702 }
 0x21d   : > { %v1362_v50 = vmax.f32 %v1354_v49, 0.0  ;;  %v1387_v42 = vmax.f32 %v1379_v48, 0.0 }
 0x21f   : > { %v3147_v55 = vmin.f32 %v3144_v54, %v1387_v42  ;;  %v3150_v46 = vmin.f32 %v3124_v33, %v1387_v42  ;;  %v1404_v47 = vmin.f32 %v3144_v54, %v1362_v50  ;;  %v3154_v1 = vmin.f32 %v3124_v33, %v1362_v50 }
 0x221   : > { %1836 = vrot.lane.b32.xlu0 %v3150_v46, %s2580_s16  ;;  %1804 = vrot.lane.b32.xlu1 %v1404_v47, %s2575_s22  ;;  %v1588_v28 = vsub.f32 %v3147_v55, %v1404_v47  ;;  %v1572_v32 = vsub.f32 %v3150_v46, %v3154_v1 }
 0x222   : > { %1772 = vrot.lane.b32.xlu2 %v3154_v1, %s2575_s22 }
 0x223   : > { %vm1596_vm9 = vcmp.ge.f32.partialorder %v1588_v28, 1.0  ;;  %vm1580_vm6 = vcmp.ge.f32.partialorder %v1572_v32, 1.0 }
 0x224   : > { %v1339_v40 = vpop.permute.xlu2 %1338  ;;  %v1604_v0 = vsel %vm1596_vm9, 1, %v2579_v8 }
 0x225   : > { %v1358_v31 = vsub.f32 %v1262_v62, %v1339_v40  ;;  %v3171_v18 = vadd.f32 %v1339_v40, %v1262_v62  ;;  %v1225_v62 = vmul.f32 %v2935_v37, %v3088_v21 }
 0x227   : > { %v3174_v5 = vmax.f32 %v1358_v31, 0.0  ;;  %v1391_v27 = vmax.f32 %v3171_v18, 0.0  ;;  %v1265_v37 = vadd.f32 %v3134_v38, %v1225_v62 }
 0x229   : > { %1838 = vrot.lane.b32.xlu1 %v3127_v9, %s2580_s16  ;;  %1612 = vrot.lane.b32.xlu0 %v1604_v0, %s2576_s11  ;;  %v3185_v26 = vmin.f32 %v3124_v33, %v1391_v27  ;;  %v3192_v3 = vmin.f32 %v3124_v33, %v3174_v5  ;;  %v1408_v62 = vmin.f32 %v3144_v54, %v3174_v5 }
 0x22a   : > { %1806 = vrot.lane.b32.xlu2 %v1405_v53, %s2575_s22  ;;  %v3188_v16 = vpop.permute.xlu1 %1700  ;;  %v1335_v15 = vpop.permute.xlu0 %1334 }
 0x22b   : > { %v1356_v11 = vsub.f32 %v1260_v20, %v1335_v15  ;;  %v1381_v23 = vadd.f32 %v1335_v15, %v1260_v20  ;;  %v1576_v19 = vsub.f32 %v3185_v26, %v3192_v3 }
 0x22c   : > { %v3194_v2 = vpop.permute.xlu2 %1666 }
 0x22d   : > { %v1364_v6 = vmax.f32 %v1356_v11, 0.0  ;;  %v1389_v30 = vmax.f32 %v1381_v23, 0.0 }
 0x22f   : > { %v3201_v61 = vmin.f32 %v3144_v54, %v1389_v30  ;;  %v3204_v35 = vmin.f32 %v3124_v33, %v1389_v30  ;;  %v3207_v17 = vmin.f32 %v3124_v33, %v1364_v6  ;;  %v1406_v52 = vmin.f32 %v3144_v54, %v1364_v6 }
 0x230   : > { %v1223_v6 = vmul.f32 %v2939_v51, %v3054_v7 }
 0x231   : > { %1614 = vrot.lane.b32.xlu1 %v1605_v14, %s2576_s11  ;;  %1774 = vrot.lane.b32.xlu0 %v3130_v59, %s2575_s22  ;;  %v1574_v57 = vsub.f32 %v3204_v35, %v3207_v17  ;;  %v1590_v48 = vsub.f32 %v3201_v61, %v1406_v52 }
 0x232   : > { %1840 = vrot.lane.b32.xlu2 %v3204_v35, %s2580_s16  ;;  %v1337_v49 = vpop.permute.xlu1 %1336  ;;  %v1263_v51 = vadd.f32 %v3120_v22, %v1223_v6  ;;  %v1224_v22 = vmul.f32 %v2957_v34, %v3071_v45 }
 0x233   : > { %v1357_v50 = vsub.f32 %v1261_v44, %v1337_v49  ;;  %v1382_v42 = vadd.f32 %v1337_v49, %v1261_v44  ;;  %vm1598_vm11 = vcmp.ge.f32.partialorder %v1590_v48, 1.0  ;;  %v3265_v49 = vmin.f32 %v3144_v54, %v1391_v27 }
 0x234   : > { %v3219_v56 = vpop.permute.xlu0 %1662  ;;  %v3221_v47 = vpop.permute.xlu2 %1708  ;;  %v1606_v31 = vsel %vm1598_vm11, 1, %v2579_v8  ;;  %v1264_v5 = vadd.f32 %v3162_v58, %v1224_v22  ;;  %vm1582_vm1 = vcmp.ge.f32.partialorder %v1574_v57, 1.0  ;;  %vm1581_vm11 = vcmp.ge.f32.partialorder %v1573_v12, 1.0 }
 0x235   : > { %v1365_v60 = vmax.f32 %v1357_v50, 0.0  ;;  %v1390_v28 = vmax.f32 %v1382_v42, 0.0  ;;  %v1592_v27 = vsub.f32 %v3265_v49, %v1408_v62 }
 0x237   : > { %v3226_v63 = vmin.f32 %v3124_v33, %v1390_v28  ;;  %v3229_v40 = vmin.f32 %v3124_v33, %v1365_v60  ;;  %v3242_v36 = vmin.f32 %v3144_v54, %v1390_v28  ;;  %v1407_v24 = vmin.f32 %v3144_v54, %v1365_v60 }
 0x238   : > { %vm1600_vm13 = vcmp.ge.f32.partialorder %v1592_v27, 1.0 }
 0x239   : > { %1776 = vrot.lane.b32.xlu1 %v3207_v17, %s2575_s22  ;;  %1808 = vrot.lane.b32.xlu0 %v1406_v52, %s2575_s22  ;;  %v1575_v53 = vsub.f32 %v3226_v63, %v3229_v40  ;;  %v1591_v38 = vsub.f32 %v3242_v36, %v1407_v24 }
 0x23a   : > { %1616 = vrot.lane.b32.xlu2 %v1606_v31, %s2576_s11 }
 0x23b   : > { %vm1599_vm12 = vcmp.ge.f32.partialorder %v1591_v38, 1.0 }
 0x23c   : > { %v3239_v0 = vpop.permute.xlu0 %1704  ;;  %v1345_v20 = vpop.permute.xlu2 %1344  ;;  %v1607_v18 = vsel %vm1599_vm12, 1, %v2579_v8 }
 0x23d   : > { %v1361_v15 = vsub.f32 %v1265_v37, %v1345_v20  ;;  %v1386_v11 = vadd.f32 %v1345_v20, %v1265_v37  ;;  %v3244_v23 = vpop.permute.xlu1 %1664 }
 0x23e   : > { %vm1678_vm3 = vcmp.ne.s32.totalorder %v3244_v23, 0 }
 0x23f   : > { %v1369_v30 = vmax.f32 %v1361_v15, 0.0  ;;  %v1394_v52 = vmax.f32 %v1386_v11, 0.0 }
 0x241   : > { %1842 = vrot.lane.b32.xlu0 %v3226_v63, %s2580_s16  ;;  %1810 = vrot.lane.b32.xlu1 %v1407_v24, %s2575_s22  ;;  %v3254_v14 = vmin.f32 %v3124_v33, %v1394_v52  ;;  %v3259_v44 = vmin.f32 %v3124_v33, %v1369_v30  ;;  %v3316_v27 = vmin.f32 %v3144_v54, %v1394_v52 }
 0x242   : > { %1778 = vrot.lane.b32.xlu2 %v3229_v40, %s2575_s22 }
 0x243   : > { %v1579_v50 = vsub.f32 %v3254_v14, %v3259_v44 }
 0x244   : > { %v1341_v48 = vpop.permute.xlu0 %1340 }
 0x245   : > { %v1359_v42 = vsub.f32 %v1263_v51, %v1341_v48  ;;  %v1384_v60 = vadd.f32 %v1341_v48, %v1263_v51  ;;  %v3269_v28 = vpop.permute.xlu1 %1706 }
 0x247   : > { %v1367_v31 = vmax.f32 %v1359_v42, 0.0  ;;  %v1392_v37 = vmax.f32 %v1384_v60, 0.0  ;;  %v1608_v60 = vsel %vm1600_vm13, 1, %v2579_v8  ;;  %vm1677_vm13 = vcmp.ne.s32.totalorder %v3219_v56, 0 }
 0x249   : > { %1844 = vrot.lane.b32.xlu1 %v3185_v26, %s2580_s16  ;;  %1618 = vrot.lane.b32.xlu0 %v1607_v18, %s2576_s11  ;;  %v3281_v20 = vmin.f32 %v3124_v33, %v1392_v37  ;;  %v3284_v15 = vmin.f32 %v3124_v33, %v1367_v31  ;;  %v3291_v24 = vmin.f32 %v3144_v54, %v1392_v37 }
 0x24a   : > { %1812 = vrot.lane.b32.xlu2 %v1408_v62, %s2575_s22  ;;  %v1409_v51 = vmin.f32 %v3144_v54, %v1367_v31  ;;  %v1411_v18 = vmin.f32 %v3144_v54, %v1369_v30 }
 0x24b   : > { %v1577_v34 = vsub.f32 %v3281_v20, %v3284_v15 }
 0x24c   : > { %v1593_v58 = vsub.f32 %v3291_v24, %v1409_v51 }
 0x24d   : > { %v1343_v11 = vpop.permute.xlu1 %1342 }
 0x24e   : > { %v1360_v6 = vsub.f32 %v1264_v5, %v1343_v11  ;;  %v1385_v38 = vadd.f32 %v1343_v11, %v1264_v5  ;;  %vm1601_vm14 = vcmp.ge.f32.partialorder %v1593_v58, 1.0  ;;  %v1595_v11 = vsub.f32 %v3316_v27, %v1411_v18 }
 0x24f   : > { %v1609_v22 = vsel %vm1601_vm14, 1, %v2579_v8 }
 0x250   : > { %v1368_v48 = vmax.f32 %v1360_v6, 0.0  ;;  %v1393_v42 = vmax.f32 %v1385_v38, 0.0  ;;  %vm1603_vm15 = vcmp.ge.f32.partialorder %v1595_v11, 1.0 }
 0x251   : > { %1620 = vrot.lane.b32.xlu1 %v1608_v60, %s2576_s11  ;;  %1780 = vrot.lane.b32.xlu0 %v3192_v3, %s2575_s22  ;;  %v1611_v30 = vsel %vm1603_vm15, 1, %v2579_v8 }
 0x252   : > { %1846 = vrot.lane.b32.xlu2 %v3281_v20, %s2580_s16  ;;  %v3302_v62 = vmin.f32 %v3124_v33, %v1393_v42  ;;  %v3305_v37 = vmin.f32 %v3124_v33, %v1368_v48  ;;  %v3319_v33 = vmin.f32 %v3144_v54, %v1393_v42  ;;  %v1410_v5 = vmin.f32 %v3144_v54, %v1368_v48  ;;  %v3333_v54 = vpop.permute.xlu2 %1672 }
 0x254   : > { %v1578_v31 = vsub.f32 %v3302_v62, %v3305_v37  ;;  %v1594_v6 = vsub.f32 %v3319_v33, %v1410_v5 }
 0x255   : > { %v1671_v48 = vpop.permute.xlu1 %1670 }
 0x256   : > { %vm1602_vm0 = vcmp.ge.f32.partialorder %v1594_v6, 1.0 }
 0x257   : > { %v1610_v52 = vsel %vm1602_vm0, 1, %v2579_v8  ;;  %v3344_v8 = vpop.permute.xlu0 %1668  ;;  %vm1585_vm0 = vcmp.ge.f32.partialorder %v1577_v34, 1.0 }
 0x259   : > { %1782 = vrot.lane.b32.xlu1 %v3284_v15, %s2575_s22  ;;  %1814 = vrot.lane.b32.xlu0 %v1409_v51, %s2575_s22 }
 0x25a   : > { %1622 = vrot.lane.b32.xlu2 %v1609_v22, %s2576_s11  ;;  %v3342_v38 = vpop.permute.xlu2 %1714 }
 0x25d   : > { %v3360_v60 = vpop.permute.xlu1 %1712 }
 0x261   : > { %1848 = vrot.lane.b32.xlu0 %v3302_v62, %s2580_s16  ;;  %1816 = vrot.lane.b32.xlu1 %v1410_v5, %s2575_s22 }
 0x262   : > { %1784 = vrot.lane.b32.xlu2 %v3305_v37, %s2575_s22 }
 0x269   : > { %1626 = vrot.lane.b32.xlu1 %v1611_v30, %s2576_s11  ;;  %1624 = vrot.lane.b32.xlu0 %v1610_v52, %s2576_s11 }
 0x26a   : > { %1818 = vrot.lane.b32.xlu2 %v1411_v18, %s2575_s22 }
 0x271   : > { %1850 = vrot.lane.b32.xlu1 %v3254_v14, %s2580_s16  ;;  %1786 = vrot.lane.b32.xlu0 %v3259_v44, %s2575_s22  ;;  %s251_s22 = sand.u32 1, %s2564_s29  }
 0x272   : > { %1868 = vrot.lane.b32.xlu2 %v3147_v55, %s2580_s16  ;;  %v3356_v55 = vpop.permute.xlu0 %1710  ;;  %s2045_s11 = sshll.u32 %s251_s22, 6  ;;  %s1964_s24 = scalar_lea.sflag [#allocation5], %s251_s22 }
 0x279   : > { %1872 = vrot.lane.b32.xlu1 %v3201_v61, %s2580_s16  ;;  %1870 = vrot.lane.b32.xlu0 %v3169_v10, %s2580_s16 }
 0x27a   : > { %1874 = vrot.lane.b32.xlu2 %v3242_v36, %s2580_s16  ;;  %v3362_v58 = vpop.permute.xlu0 %1674 }
 0x27c   : > { %v3352_v51 = vpop.permute.xlu2 %1772 }
 0x281   : > { %1876 = vrot.lane.b32.xlu0 %v3265_v49, %s2580_s16 }
 0x284   : > { %v3358_v42 = vpop.permute.xlu2 %1806 }
 0x28c   : > { %v3364_v61 = vpop.permute.xlu2 %1840 }
 0x293   : > { %v3366_v10 = vpop.permute.xlu0 %1836  ;;  %v3368_v22 = vpop.permute.xlu1 %1804 }
 0x294   : > { %v1617_v36 = vpop.permute.xlu2 %1616 }
 0x295   : > { %vm1630_vm2 = vcmp.ne.s32.totalorder %v1617_v36, 0 }
 0x296   : > { %vm1638_vm4 = vmand %vm1582_vm1, %vm1630_vm2  ;;  %vm1681_vm2 = vcmp.ne.s32.totalorder %v1671_v48, 0 }
 0x297   : > { %vm1686_vm5 = vmand %vm1638_vm4, %vm1678_vm3 }
 0x298   : > { %v1726_v49 = vsel %vm1686_vm5, %v3239_v0, -1.0  ;;  %vm1583_vm5 = vcmp.ge.f32.partialorder %v1575_v53, 1.0 }
 0x299   : > { %1744 = vrot.lane.b32.xlu2 %v1726_v49, %s2577_s12 }
 0x29b   : > { %v1613_v18 = vpop.permute.xlu0 %1612  ;;  %v3376_v5 = vpop.permute.xlu1 %1838 }
 0x29c   : > { %vm1628_vm7 = vcmp.ne.s32.totalorder %v1613_v18, 0  ;;  %v3381_v11 = vpop.permute.xlu2 %1778 }
 0x29d   : > { %vm1636_vm9 = vmand %vm1580_vm6, %vm1628_vm7  ;;  %vm1679_vm7 = vcmp.ne.s32.totalorder %v3194_v2, 0 }
 0x29e   : > { %vm1684_vm10 = vmand %vm1636_vm9, %vm1676_vm8 }
 0x29f   : > { %v1724_v35 = vsel %vm1684_vm10, %v3188_v16, -1.0  ;;  %vm1584_vm10 = vcmp.ge.f32.partialorder %v1576_v19, 1.0 }
 0x2a0   : > { %1740 = vrot.lane.b32.xlu0 %v1724_v35, %s2577_s12 }
 0x2a3   : > { %v3386_v17 = vpop.permute.xlu0 %1774  ;;  %v1615_v57 = vpop.permute.xlu1 %1614 }
 0x2a4   : > { %v3388_v23 = vpop.permute.xlu2 %1812  ;;  %vm1629_vm12 = vcmp.ne.s32.totalorder %v1615_v57, 0 }
 0x2a5   : > { %vm1637_vm14 = vmand %vm1581_vm11, %vm1629_vm12  ;;  %vm1680_vm12 = vcmp.ne.s32.totalorder %v3344_v8, 0 }
 0x2a6   : > { %vm1685_vm15 = vmand %vm1637_vm14, %vm1677_vm13 }
 0x2a7   : > { %v1725_v4 = vsel %vm1685_vm15, %v3140_v13, -1.0  ;;  %vm1586_vm15 = vcmp.ge.f32.partialorder %v1578_v31, 1.0 }
 0x2a8   : > { %1742 = vrot.lane.b32.xlu1 %v1725_v4, %s2577_s12 }
 0x2ab   : > { %v3396_v46 = vpop.permute.xlu0 %1808  ;;  %v3398_v1 = vpop.permute.xlu1 %1776 }
 0x2ac   : > { %v3400_v32 = vpop.permute.xlu2 %1846 }
 0x2b3   : > { %v3402_v6 = vpop.permute.xlu0 %1842  ;;  %v3404_v30 = vpop.permute.xlu1 %1810 }
 0x2b4   : > { %v1623_v9 = vpop.permute.xlu2 %1622 }
 0x2b5   : > { %vm1633_vm1 = vcmp.ne.s32.totalorder %v1623_v9, 0 }
 0x2b6   : > { %vm1641_vm3 = vmand %vm1585_vm0, %vm1633_vm1 }
 0x2b7   : > { %vm1689_vm4 = vmand %vm1641_vm3, %vm1681_vm2  ;;  %vm1682_vm2 = vcmp.ne.s32.totalorder %v3333_v54, 0 }
 0x2b8   : > { %v1729_v59 = vsel %vm1689_vm4, %v3356_v55, -1.0 }
 0x2b9   : > { %1750 = vrot.lane.b32.xlu2 %v1729_v59, %s2577_s12 }
 0x2bb   : > { %v1619_v12 = vpop.permute.xlu0 %1618  ;;  %v3411_v56 = vpop.permute.xlu1 %1844 }
 0x2bc   : > { %vm1631_vm6 = vcmp.ne.s32.totalorder %v1619_v12, 0  ;;  %v3433_v53 = vpop.permute.xlu2 %1784 }
 0x2bd   : > { %vm1639_vm8 = vmand %vm1583_vm5, %vm1631_vm6  ;;  %vm1587_vm5 = vcmp.ge.f32.partialorder %v1579_v50, 1.0  ;;  %vm1683_vm6 = vcmp.ne.s32.totalorder %v3362_v58, 0 }
 0x2be   : > { %vm1687_vm9 = vmand %vm1639_vm8, %vm1679_vm7 }
 0x2bf   : > { %v1727_v20 = vsel %vm1687_vm9, %v3269_v28, -1.0  ;;  %vm1901_vm9 = vcmask 48128  }
 0x2c0   : > { %1746 = vrot.lane.b32.xlu0 %v1727_v20, %s2577_s12 }
 0x2c1   : > { %1880 = vrot.lane.b32.xlu2 %v3319_v33, %s2580_s16 }
 0x2c3   : > { %v3421_v15 = vpop.permute.xlu0 %1780  ;;  %v1621_v34 = vpop.permute.xlu1 %1620 }
 0x2c4   : > { %vm1632_vm11 = vcmp.ne.s32.totalorder %v1621_v34, 0  ;;  %v3439_v26 = vpop.permute.xlu2 %1818 }
 0x2c5   : > { %vm1640_vm13 = vmand %vm1584_vm10, %vm1632_vm11  ;;  %vm1892_vm10 = vcmask 23552   ;;  %vm1910_vm11 = vcmask 72704  }
 0x2c6   : > { %vm1688_vm14 = vmand %vm1640_vm13, %vm1680_vm12  ;;  %v1895_v50 = vsel %vm1892_vm10, %v3023_v43, %v3239_v0  ;;  %vm1919_vm12 = vcmask 97280   ;;  %vm1928_vm13 = vcmask 121856   ;;  %v1893_v35 = vsel %vm1892_vm10, %v3012_v25, %v3188_v16 }
 0x2c7   : > { %v1728_v2 = vsel %vm1688_vm14, %v3221_v47, -1.0  ;;  %vm1937_vm14 = vcmask 146432   ;;  %v1894_v25 = vsel %vm1892_vm10, %v3017_v41, %v3140_v13  ;;  %v1896_v41 = vsel %vm1892_vm10, %v3030_v29, %v3269_v28 }
 0x2c8   : > { %1748 = vrot.lane.b32.xlu1 %v1728_v2, %s2577_s12  ;;  %v1897_v29 = vsel %vm1892_vm10, %v3040_v39, %v3221_v47  ;;  %v1898_v39 = vsel %vm1892_vm10, %v3054_v7, %v3356_v55  ;;  %v1899_v47 = vsel %vm1892_vm10, %v3071_v45, %v3360_v60 }
 0x2cb   : > { %v3429_v63 = vpop.permute.xlu0 %1814  ;;  %v3431_v40 = vpop.permute.xlu1 %1782 }
 0x2cc   : > { %v1869_v62 = vpop.permute.xlu2 %1868 }
 0x2d3   : > { %v3435_v33 = vpop.permute.xlu0 %1848  ;;  %v3437_v52 = vpop.permute.xlu1 %1816 }
 0x2d4   : > { %v1875_v14 = vpop.permute.xlu2 %1874 }
 0x2db   : > { %v1625_v3 = vpop.permute.xlu0 %1624  ;;  %v1627_v19 = vpop.permute.xlu1 %1626 }
 0x2dc   : > { %vm1634_vm0 = vcmp.ne.s32.totalorder %v1625_v3, 0  ;;  %vm1635_vm1 = vcmp.ne.s32.totalorder %v1627_v19, 0 }
 0x2dd   : > { %vm1642_vm3 = vmand %vm1586_vm15, %vm1634_vm0  ;;  %vm1946_vm15 = vcmask 171008  }
 0x2de   : > { %vm1690_vm4 = vmand %vm1642_vm3, %vm1682_vm2 }
 0x2df   : > { %vm1643_vm7 = vmand %vm1587_vm5, %vm1635_vm1  ;;  %v1730_v8 = vsel %vm1690_vm4, %v3360_v60, -1.0 }
 0x2e0   : > { %vm1691_vm8 = vmand %vm1643_vm7, %vm1683_vm6  ;;  %1752 = vrot.lane.b32.xlu0 %v1730_v8, %s2577_s12 }
 0x2e1   : > { %v1731_v37 = vsel %vm1691_vm8, %v3342_v38, -1.0 }
 0x2e2   : > { %1754 = vrot.lane.b32.xlu1 %v1731_v37, %s2577_s12  ;;  %s3476_s12 = scalar_lea.vmem [#allocation4], %s2045_s11 }
 0x2e3   : > { %v3457_v44 = vpop.permute.xlu1 %1850  ;;  %v3468_v54 = vpop.permute.xlu0 %1786  ;;  %s1976_s20 = sshll.u32 %s3476_s12, 4  ;;  %s1977_s20 = int_to_ptr.vmem [resolvable:$true] %s1976_s20 }
 0x2e8   : > { %1882 = vrot.lane.b32.xlu0 %v3316_v27, %s2580_s16 }
 0x2ea   : > { %1878 = vrot.lane.b32.xlu1 %v3291_v24, %s2580_s16 }
 0x2eb   : > { %v1873_v58 = vpop.permute.xlu1 %1872  ;;  %v1871_v49 = vpop.permute.xlu0 %1870 }
 0x2f3   : > { %v1745_v31 = vpop.permute.xlu2 %1744  ;;  %v1877_v18 = vpop.permute.xlu0 %1876 }
 0x2f4   : > { %v1904_v27 = vsel %vm1901_vm9, %v1895_v50, %v1745_v31  ;;  %v1900_v50 = vsel %vm1892_vm10, %v3088_v21, %v3342_v38 }
 0x2f5   : > { %v1913_v24 = vsel %vm1910_vm11, %v1904_v27, %v3398_v1 }
 0x2f6   : > { %v1922_v48 = vsel %vm1919_vm12, %v1913_v24, %v3396_v46 }
 0x2f7   : > { %v1931_v43 = vsel %vm1928_vm13, %v1922_v48, %v3364_v61 }
 0x2f8   : > { %v1940_v0 = vsel %vm1937_vm14, %v1931_v43, %v1873_v58 }
 0x2f9   : > { %v1949_v36 = vsel %vm1946_vm15, %v1940_v0, 0.0 }
 0x2fa   : > { %1957 = vst [vmem:[%s3476_s12 + $0x10] sm:$0xff] %v1949_v36 }
 0x312   : > { %v1741_v57 = vpop.permute.xlu0 %1740 }
 0x313   : > { %v1902_v4 = vsel %vm1901_vm9, %v1893_v35, %v1741_v57 }
 0x314   : > { %v1911_v61 = vsel %vm1910_vm11, %v1902_v4, %v3352_v51 }
 0x315   : > { %v1920_v46 = vsel %vm1919_vm12, %v1911_v61, %v3368_v22 }
 0x316   : > { %v1929_v1 = vsel %vm1928_vm13, %v1920_v46, %v3366_v10 }
 0x317   : > { %v1938_v9 = vsel %vm1937_vm14, %v1929_v1, %v1869_v62 }
 0x318   : > { %v1947_v59 = vsel %vm1946_vm15, %v1938_v9, 0.0 }
 0x319   : > { %1955 = vst [vmem:[%s3476_s12] sm:$0xff] %v1947_v59 }
 0x31a   : > { %v1743_v16 = vpop.permute.xlu1 %1742 }
 0x31b   : > { %v1903_v12 = vsel %vm1901_vm9, %v1894_v25, %v1743_v16 }
 0x31c   : > { %v1912_v51 = vsel %vm1910_vm11, %v1903_v12, %v3386_v17 }
 0x31d   : > { %v1921_v22 = vsel %vm1919_vm12, %v1912_v51, %v3358_v42 }
 0x31e   : > { %v1930_v10 = vsel %vm1928_vm13, %v1921_v22, %v3376_v5 }
 0x31f   : > { %v1939_v20 = vsel %vm1937_vm14, %v1930_v10, %v1871_v49 }
 0x320   : > { %v1948_v34 = vsel %vm1946_vm15, %v1939_v20, 0.0 }
 0x321   : > { %1956 = vst [vmem:[%s3476_s12 + $0x8] sm:$0xff] %v1948_v34 }
 0x332   : > { %v1747_v13 = vpop.permute.xlu0 %1746 }
 0x333   : > { %v1905_v2 = vsel %vm1901_vm9, %v1896_v41, %v1747_v13 }
 0x334   : > { %v1914_v17 = vsel %vm1910_vm11, %v1905_v2, %v3381_v11 }
 0x335   : > { %v1923_v42 = vsel %vm1919_vm12, %v1914_v17, %v3404_v30 }
 0x336   : > { %v1932_v5 = vsel %vm1928_vm13, %v1923_v42, %v3402_v6 }
 0x337   : > { %v1941_v3 = vsel %vm1937_vm14, %v1932_v5, %v1875_v14  ;;  %v1751_v14 = vpop.permute.xlu2 %1750 }
 0x338   : > { %v1950_v19 = vsel %vm1946_vm15, %v1941_v3, 0.0 }
 0x339   : > { %1958 = vst [vmem:[%s3476_s12 + $0x18] sm:$0xff] %v1950_v19 }
 0x33a   : > { %v1749_v28 = vpop.permute.xlu1 %1748 }
 0x33b   : > { %v1906_v8 = vsel %vm1901_vm9, %v1897_v29, %v1749_v28 }
 0x33c   : > { %v1915_v11 = vsel %vm1910_vm11, %v1906_v8, %v3421_v15 }
 0x33d   : > { %v1924_v30 = vsel %vm1919_vm12, %v1915_v11, %v3388_v23  ;;  %v1907_v23 = vsel %vm1901_vm9, %v1898_v39, %v1751_v14 }
 0x33e   : > { %v1933_v6 = vsel %vm1928_vm13, %v1924_v30, %v3411_v56  ;;  %v1916_v60 = vsel %vm1910_vm11, %v1907_v23, %v3431_v40 }
 0x33f   : > { %v1942_v62 = vsel %vm1937_vm14, %v1933_v6, %v1877_v18  ;;  %v1881_v27 = vpop.permute.xlu2 %1880  ;;  %v1925_v40 = vsel %vm1919_vm12, %v1916_v60, %v3429_v63 }
 0x340   : > { %v1951_v37 = vsel %vm1946_vm15, %v1942_v62, 0.0 }
 0x341   : > { %1959 = vst [vmem:[%s3476_s12 + $0x20] sm:$0xff] %v1951_v37 }
 0x352   : > { %v1753_v15 = vpop.permute.xlu0 %1752 }
 0x353   : > { %v1908_v56 = vsel %vm1901_vm9, %v1899_v47, %v1753_v15 }
 0x354   : > { %v1917_v31 = vsel %vm1910_vm11, %v1908_v56, %v3433_v53  ;;  %v1755_v7 = vpop.permute.xlu1 %1754 }
 0x355   : > { %v1926_v55 = vsel %vm1919_vm12, %v1917_v31, %v3437_v52  ;;  %v1909_v45 = vsel %vm1901_vm9, %v1900_v50, %v1755_v7 }
 0x356   : > { %v1935_v24 = vsel %vm1928_vm13, %v1926_v55, %v3435_v33  ;;  %v1918_v48 = vsel %vm1910_vm11, %v1909_v45, %v3468_v54 }
 0x357   : > { %v1944_v21 = vsel %vm1937_vm14, %v1935_v24, %v1881_v27  ;;  %v1927_v38 = vsel %vm1919_vm12, %v1918_v48, %v3439_v26  ;;  %v1934_v26 = vsel %vm1928_vm13, %v1925_v40, %v3400_v32 }
 0x358   : > { %v1953_v53 = vsel %vm1946_vm15, %v1944_v21, 0.0  ;;  %v1936_v52 = vsel %vm1928_vm13, %v1927_v38, %v3457_v44 }
 0x359   : > { %1961 = vst [vmem:[%s3476_s12 + $0x30] sm:$0xff] %v1953_v53 }
 0x35a   : > { %v1883_v33 = vpop.permute.xlu0 %1882 }
 0x35b   : > { %v1945_v54 = vsel %vm1937_vm14, %v1936_v52, %v1883_v33 }
 0x35c   : > { %v1954_v58 = vsel %vm1946_vm15, %v1945_v54, 0.0  ;;  %v1879_v43 = vpop.permute.xlu1 %1878 }
 0x35d   : > { %1962 = vst [vmem:[%s3476_s12 + $0x38] sm:$0xff] %v1954_v58  ;;  %v1943_v63 = vsel %vm1937_vm14, %v1934_v26, %v1879_v43 }
 0x35e   : > { %v1952_v0 = vsel %vm1946_vm15, %v1943_v63, 0.0 }
 0x35f   : > { %1960 = vst [vmem:[%s3476_s12 + $0x28] sm:$0xff] %v1952_v0 }
 0x360   : > { %2535 = shalt.err (!%p2532_p3)
}
 0x361   : > { %s2581_s22 = smov 128   ;;  %s2582_s12 = smov 8  }
 0x362   : > { %2398 = dma.vmem_to_hbm [thread:$0]  (%p2664_p5), %s1977_s20, 1024, %s1979_s21, %s1964_s24, %s2581_s22, %s2581_s22, %s2582_s12  }
 0x363 PF: > { %p2404_p4 = scmp.ge.s32.totalorder %s2572_s8, 2  ;;  %s1993_s17 = sand.u32 1, %s2560_s28  }
 0x364   : > { %s1994_s0 = scalar_lea.sflag [#allocation5], %s1993_s17 }
 0x365   : > { %p2401_p7 = pnand %p2404_p4, %p2668_p6 }
 0x367   : > { %p2402_p8 = pneg %p2401_p7 }
 0x369   : > { %2555 = dma.done.wait (%p2402_p8), %s1994_s0, 1024  }
 0x36a   : > { %2557 = vsyncadd (%p2402_p8), %s1994_s0, 4294966272  ;;  %p25_p9 = scmp.ge.s32.totalorder %s2651_s10, 4   ;;  %s3614_s28 = smov %s2564_s29 }
 0x36b   : > { %s3615_s29 = smov %s2568_s30  ;;  %s3616_s30 = smov %s2662_s13 }
 0x36c   : > { %s3617_s8 = smov %s2651_s10  ;;  %27 = sbr.rel (!%p25_p9) target bundleno = 9 (0x9), region = 89 }
 0x371   :  { %2000 = vsyncpa [#allocation5], 1 }
 0x372   :  { %2002 = vsyncpa [#allocation5 + $0x1], 1 }

</bundles_post_ra>
